<compile_context>
chip_gen: v7x
topology: tpu7x:2x2x1
jax: 0.10.0
libtpu: 0.0.40
codegen_flags: <defaults>
</compile_context>

<pallas_src>
import functools

import numpy as np
import jax
import jax.numpy as jnp
from jax.experimental import pallas as pl
from jax.experimental.pallas import tpu as pltpu

_EPS = 1e-10        # FeatureInterpolator eps (clamp on distance)
_BN_EPS = 1e-5      # BatchNorm1d eps
_NUM_NEIGHBORS = 3
_BIG = 1e30


def _fp_kernel(qxyz_ref, kxyz_ref, qfeat_ref, afeat_ref,
               w1b_ref, b1_ref, w2_ref, b2_ref, out_ref,
               *, matmul_dtype, approx_recip):
    """One (batch, dense-point-tile) grid step.  Channel-first layouts.

    qxyz_ref : (1, 3,  TQ)   dense (query) xyz tile
    kxyz_ref : (1, N2, 3)    sparse (key) xyz (full, channel-last)
    qfeat_ref: (1, C1, TQ)   dense feature tile (skip connection)
    afeat_ref: (1, H1, N2)   w1a @ key_feature (first conv folded into features)
    w1b_ref  : (H1, C1)      first-layer weight, dense-feature part
    b1_ref   : (H1, 1)
    w2_ref   : (H2, H1)
    b2_ref   : (H2, 1)
    out_ref  : (1, H2, TQ)   lane-dense output tile (already (B, H2, N1) layout)
    """
    qx = qxyz_ref[0].astype(jnp.float32)    # (3, TQ)
    kx = kxyz_ref[0].astype(jnp.float32)    # (N2, 3)

    n2 = kx.shape[0]
    tq = qx.shape[1]

    def recip(x):
        return pl.reciprocal(x, approx=True) if approx_recip else 1.0 / x

    # ---- pairwise squared distances (N2, TQ): direct differences on the VPU.
    d0 = kx[:, 0:1] - qx[0:1, :]
    d1 = kx[:, 1:2] - qx[1:2, :]
    d2 = kx[:, 2:3] - qx[2:3, :]
    dist = d0 * d0 + d1 * d1 + d2 * d2                                # (N2, TQ)

    # ---- 3-NN selection (iterative min extraction over the key axis).
    # TODO(synk): assumes knn_distance returns *squared* distances (as in the
    # reference PointNet++ FP); take sqrt here if it returns Euclidean.
    iota = jax.lax.broadcasted_iota(jnp.int32, (n2, tq), 0)
    dcur = dist
    w_acc = jnp.zeros((n2, tq), jnp.float32)   # unnormalized scatter weights
    inv_sum = jnp.zeros((1, tq), jnp.float32)  # sum of inverse distances
    for j in range(_NUM_NEIGHBORS):
        mval = jnp.min(dcur, axis=0, keepdims=True)                   # (1, TQ)
        cand = jnp.where(dcur == mval, iota, n2)
        idx = jnp.min(cand, axis=0, keepdims=True)                    # (1, TQ)
        mask = iota == idx                                            # (N2, TQ)
        inv_d = recip(jnp.maximum(mval, _EPS))                        # (1, TQ)
        w_acc = jnp.where(mask, inv_d, w_acc)
        inv_sum = inv_sum + inv_d
        if j + 1 < _NUM_NEIGHBORS:          # drop the dead pass on the last iter
            dcur = jnp.where(mask, _BIG, dcur)

    mm = matmul_dtype
    f32_mm = np.dtype(mm) == np.dtype(np.float32)
    norm = recip(inv_sum)                                             # (1, TQ)

    # ---- interpolation fused with the first conv's interp-half:
    # (H1, N2) x (N2, TQ) -> (H1, TQ), f32 accumulation.
    a = afeat_ref[0]                                                  # (H1, N2)
    if f32_mm:
        h_interp = jax.lax.dot_general(a, w_acc, (((1,), (0,)), ((), ())),
                                       preferred_element_type=jnp.float32)
        h_interp = h_interp * norm          # normalize AFTER, on the small result
    else:
        # bf16: normalize BEFORE the cast so unnormalized inverse distances
        # (up to 1/_EPS) don't lose precision in bf16.
        w_op = (w_acc * norm).astype(mm)
        h_interp = jax.lax.dot_general(a, w_op, (((1,), (0,)), ((), ())),
                                       preferred_element_type=jnp.float32)

    # ---- SharedMLP (concat-free): h = h_interp + w1b@qf + b1; ReLU; layer 2.
    qf = qfeat_ref[0].astype(mm)                                      # (C1, TQ)
    h = (h_interp
         + jnp.dot(w1b_ref[...], qf, preferred_element_type=jnp.float32)
         + b1_ref[...])
    h = jnp.maximum(h, 0.0)                                           # (H1, TQ)
    o = jnp.dot(w2_ref[...], h.astype(mm),
                preferred_element_type=jnp.float32) + b2_ref[...]
    o = jnp.maximum(o, 0.0)                                           # (H2, TQ)

    out_ref[0] = o.astype(out_ref.dtype)


def _vmem_capacity_bytes():
    """Per-core VMEM capacity (64 MiB on v7x, 128 MiB on v5e/v6e)."""
    try:
        info = pltpu.get_tpu_info()
        return int(getattr(info, "vmem_capacity_bytes", 64 * 1024 * 1024))
    except Exception:
        return 64 * 1024 * 1024   # conservative fallback (v7x per-TC)


def _pick_tile(n1_pad, n2, batch, vmem_bytes):
    """Largest lane-dense tile (multiple of 128) dividing n1_pad such that the
    ~8 live (N2, TQ) f32 selection temporaries stay inside a VMEM budget, and
    small enough that the grid has >= 2 steps (v7x 2-TC sharding)."""
    per_col = 4 * (8 * n2 + 128)                   # bytes of temps per query col
    budget = max(int(0.30 * vmem_bytes), 4 * 1024 * 1024)
    cap = max(128, min(2048, (budget // per_col) // 128 * 128))

    tq = 128
    t = 128
    while t <= min(cap, n1_pad):
        if n1_pad % t == 0:
            tq = t
        t += 128

    # Megacore balance: prefer at least two grid steps overall.
    while batch * (n1_pad // tq) < 2 and tq > 128:
        t = tq - 128
        while t > 128 and n1_pad % t != 0:
            t -= 128
        if n1_pad % t != 0:
            break
        tq = t
    return tq


def feature_propagation(dense_xyz, sparse_xyz, dense_feature, sparse_feature,
                        w1, b1, w2, b2, *, matmul_dtype=jnp.float32,
                        approx_recip=False, out_dtype=None):
    """Wrapper matching FeaturePropagation.forward (eval mode, BN folded).

    dense_xyz:      (B, 3,  N1)
    sparse_xyz:     (B, 3,  N2)
    dense_feature:  (B, C1, N1)
    sparse_feature: (B, C2, N2)
    w1: (C2+C1, H1), b1: (1, H1), w2: (H1, H2), b2: (1, H2)   (BN-folded)
    returns         (B, H2, N1)
    """
    B, _, N1 = dense_xyz.shape
    N2 = sparse_xyz.shape[2]
    C1 = dense_feature.shape[1]
    C2 = sparse_feature.shape[1]
    H1 = w1.shape[1]
    H2 = w2.shape[1]
    if N2 < _NUM_NEIGHBORS:
        raise ValueError(
            "FeaturePropagation needs at least %d sparse points, got %d"
            % (_NUM_NEIGHBORS, N2))
    if out_dtype is None:
        out_dtype = dense_feature.dtype

    # Pad the dense-point axis to a multiple of 128: output tiles are always
    # lane-dense (unmasked stores) and the grid never collapses to 1 step/batch.
    n1_pad = ((N1 + 127) // 128) * 128
    pad = n1_pad - N1
    qxyz = dense_xyz
    qfeat = dense_feature
    if pad:
        qxyz = jnp.pad(qxyz, ((0, 0), (0, 0), (0, pad)))
        qfeat = jnp.pad(qfeat, ((0, 0), (0, 0), (0, pad)))

    # Only the tiny sparse xyz is transposed; the big streams keep the caller's
    # dtype and channel-first layout (no forced-f32 HBM passes, no transposes).
    kxyz = jnp.transpose(sparse_xyz, (0, 2, 1))                        # (B, N2, 3)

    # Fold the interpolated-feature half of the first conv into the sparse
    # features, once per batch in the wrapper:  A = w1a @ key_feature.
    # Column-wise inverse-distance normalization commutes with this matmul.
    w1a = jnp.transpose(w1[:C2, :]).astype(jnp.float32)                # (H1, C2)
    afeat = jnp.einsum("hc,bcn->bhn", w1a,
                       sparse_feature.astype(jnp.float32))             # (B, H1, N2)
    afeat = afeat.astype(matmul_dtype)

    # Constant matmul operands are cast once here (not per-tile in the kernel).
    w1b = jnp.transpose(w1[C2:, :]).astype(matmul_dtype)               # (H1, C1)
    b1c = jnp.transpose(b1).astype(jnp.float32)                        # (H1, 1)
    w2t = jnp.transpose(w2).astype(matmul_dtype)                       # (H2, H1)
    b2c = jnp.transpose(b2).astype(jnp.float32)                        # (H2, 1)

    vmem_bytes = _vmem_capacity_bytes()
    tq = _pick_tile(n1_pad, N2, B, vmem_bytes)
    grid = (B, n1_pad // tq)
    # Leave ~20 MiB headroom under the physical capacity (44 MiB on v7x,
    # 96 MiB cap on v5e/v6e).
    vmem_limit = int(max(32 * 1024 * 1024,
                         min(vmem_bytes - 20 * 1024 * 1024,
                             96 * 1024 * 1024)))

    tile_spec = lambda shape: pl.BlockSpec(shape, lambda b, t: (b, 0, t))
    batch_spec = lambda shape: pl.BlockSpec(shape, lambda b, t: (b, 0, 0))
    param_spec = lambda shape: pl.BlockSpec(shape, lambda b, t: (0, 0))

    flops = int(8 * B * n1_pad * N2                      # distances + selection
                + 2 * B * n1_pad * N2 * H1               # fused interp matmul
                + 2 * B * n1_pad * (C1 * H1 + H1 * H2))  # remaining MLP
    bytes_accessed = int(qxyz.size * qxyz.dtype.itemsize
                         + kxyz.size * kxyz.dtype.itemsize
                         + qfeat.size * qfeat.dtype.itemsize
                         + afeat.size * afeat.dtype.itemsize
                         + 4 * (w1.size + b1.size + w2.size + b2.size)
                         + B * H2 * n1_pad * jnp.dtype(out_dtype).itemsize)
    cost = pl.CostEstimate(flops=flops,
                           transcendentals=int(4 * B * n1_pad),
                           bytes_accessed=bytes_accessed)

    kernel = functools.partial(_fp_kernel, matmul_dtype=matmul_dtype,
                               approx_recip=approx_recip)

    out = pl.pallas_call(
        kernel,
        out_shape=jax.ShapeDtypeStruct((B, H2, n1_pad), out_dtype),
        grid=grid,
        in_specs=[
            tile_spec((1, 3, tq)),       # dense xyz tile (channel-first)
            batch_spec((1, N2, 3)),      # sparse xyz (full, channel-last)
            tile_spec((1, C1, tq)),      # dense feature tile
            batch_spec((1, H1, N2)),     # folded sparse features (w1a @ kfeat)
            param_spec((H1, C1)),
            param_spec((H1, 1)),
            param_spec((H2, H1)),
            param_spec((H2, 1)),
        ],
        out_specs=tile_spec((1, H2, tq)),   # lane-dense, already (B, H2, N1)
        compiler_params=pltpu.CompilerParams(
            dimension_semantics=("parallel", "parallel"),
            vmem_limit_bytes=vmem_limit),
        cost_estimate=cost,
    )(qxyz, kxyz, qfeat, afeat, w1b, b1c, w2t, b2c)

    if pad:
        out = out[:, :, :N1]
    return out   # (B, H2, N1)


def make_fused_mlp_params(key, cin, mlp_channels):
    """Deterministically init Conv1d(k=1) + BatchNorm1d (eval) params and fold
    the BN affine into the conv, producing (Cin, Cout) weights + (1, Cout) bias."""
    params = []
    c_prev = cin
    for cout in mlp_channels:
        key, k_w, k_b, k_g, k_be, k_m, k_v = jax.random.split(key, 7)
        w = jax.random.normal(k_w, (cout, c_prev), jnp.float32) * 0.1   # conv weight
        b = jax.random.normal(k_b, (cout,), jnp.float32) * 0.1          # conv bias
        gamma = 1.0 + 0.1 * jax.random.normal(k_g, (cout,), jnp.float32)
        beta = 0.1 * jax.random.normal(k_be, (cout,), jnp.float32)
        running_mean = 0.1 * jax.random.normal(k_m, (cout,), jnp.float32)
        running_var = 1.0 + 0.1 * jax.random.uniform(k_v, (cout,), jnp.float32)
        scale = gamma / jnp.sqrt(running_var + _BN_EPS)
        w_fused = (w * scale[:, None]).T                                 # (Cin, Cout)
        b_fused = ((b - running_mean) * scale + beta)[None, :]           # (1, Cout)
        params.append((w_fused, b_fused))
        c_prev = cout
    return params


def reference_jax(dense_xyz, sparse_xyz, dense_feature, sparse_feature, w1, b1, w2, b2):
    """Pure-JAX reference for a sanity check."""
    q = jnp.transpose(dense_xyz, (0, 2, 1)).astype(jnp.float32)   # (B, N1, 3)
    k = jnp.transpose(sparse_xyz, (0, 2, 1)).astype(jnp.float32)  # (B, N2, 3)
    d = jnp.sum((q[:, :, None, :] - k[:, None, :, :]) ** 2, axis=-1)   # (B,N1,N2)
    neg_d, idx = jax.lax.top_k(-d, _NUM_NEIGHBORS)
    dist = -neg_d
    inv = 1.0 / jnp.maximum(dist, _EPS)
    w = inv / jnp.sum(inv, axis=-1, keepdims=True)                      # (B,N1,3)
    kf = jnp.transpose(sparse_feature, (0, 2, 1)).astype(jnp.float32)   # (B,N2,C2)
    gathered = jnp.take_along_axis(kf[:, None, :, :],
                                   idx[:, :, :, None], axis=2)          # (B,N1,3,C2)
    interp = jnp.sum(gathered * w[..., None], axis=2)                   # (B,N1,C2)
    x = jnp.concatenate(
        [interp, jnp.transpose(dense_feature, (0, 2, 1)).astype(jnp.float32)],
        axis=-1)
    h = jnp.maximum(x @ w1 + b1, 0.0)
    o = jnp.maximum(h @ w2 + b2, 0.0)
    return jnp.transpose(o, (0, 2, 1))


if __name__ == "__main__":
    # FeaturePropagation(in_channels=C2, in_channels_prev=C1,
    #                    mlp_channels=(32, 16), num_neighbors=3)
    C1, C2 = 4, 6                 # dense (skip) / sparse feature channels
    mlp_channels = (32, 16)

    key = jax.random.PRNGKey(0)
    kp, key = jax.random.split(key)
    (w1, b1), (w2, b2) = make_fused_mlp_params(kp, C2 + C1, mlp_channels)

    # Case 1: N1 a multiple of 128 (no padding path).
    B, N1, N2 = 2, 256, 64
    k1, k2, k3, k4, key = jax.random.split(key, 5)
    dense_xyz = jax.random.normal(k1, (B, 3, N1), jnp.float32)
    sparse_xyz = jax.random.normal(k2, (B, 3, N2), jnp.float32)
    dense_feature = jax.random.normal(k3, (B, C1, N1), jnp.float32)
    sparse_feature = jax.random.normal(k4, (B, C2, N2), jnp.float32)

    out = feature_propagation(dense_xyz, sparse_xyz, dense_feature,
                              sparse_feature, w1, b1, w2, b2)
    out = jax.block_until_ready(out)
    assert out.shape == (B, mlp_channels[-1], N1), out.shape
    ref = reference_jax(dense_xyz, sparse_xyz, dense_feature, sparse_feature,
                        w1, b1, w2, b2)
    err = float(jnp.max(jnp.abs(out - ref)))
    assert jnp.allclose(out, ref, atol=2e-4, rtol=2e-4), err

    # Case 2: irregular N1 (exercises the lane-dense padding path), B=1.
    B2, N1b, N2b = 1, 200, 48
    k1, k2, k3, k4, key = jax.random.split(key, 5)
    dxyz2 = jax.random.normal(k1, (B2, 3, N1b), jnp.float32)
    sxyz2 = jax.random.normal(k2, (B2, 3, N2b), jnp.float32)
    dfeat2 = jax.random.normal(k3, (B2, C1, N1b), jnp.float32)
    sfeat2 = jax.random.normal(k4, (B2, C2, N2b), jnp.float32)

    out2 = feature_propagation(dxyz2, sxyz2, dfeat2, sfeat2, w1, b1, w2, b2)
    out2 = jax.block_until_ready(out2)
    assert out2.shape == (B2, mlp_channels[-1], N1b), out2.shape
    ref2 = reference_jax(dxyz2, sxyz2, dfeat2, sfeat2, w1, b1, w2, b2)
    err2 = float(jnp.max(jnp.abs(out2 - ref2)))
    assert jnp.allclose(out2, ref2, atol=2e-4, rtol=2e-4), err2

    print("KERNEL_OK")
</pallas_src>

<mosaic_0001>
module attributes {stable_mosaic.version = 11 : i64} {
  func.func @_fp_kernel(%arg0: i32, %arg1: i32, %arg2: memref<1x3x256xf32, #tpu.memory_space<vmem>>, %arg3: memref<1x64x3xf32, #tpu.memory_space<vmem>>, %arg4: memref<1x4x256xf32, #tpu.memory_space<vmem>>, %arg5: memref<1x32x64xf32, #tpu.memory_space<vmem>>, %arg6: memref<32x4xf32, #tpu.memory_space<vmem>>, %arg7: memref<32x1xf32, #tpu.memory_space<vmem>>, %arg8: memref<16x32xf32, #tpu.memory_space<vmem>>, %arg9: memref<16x1xf32, #tpu.memory_space<vmem>>, %arg10: memref<1x16x256xf32, #tpu.memory_space<vmem>>) attributes {dimension_semantics = [#tpu.dimension_semantics<parallel>, #tpu.dimension_semantics<parallel>], iteration_bounds = array<i64: 2, 1>, scalar_prefetch = 0 : i64, scratch_operands = 0 : i64, tpu.core_type = #tpu.core_type<tc>, window_params = [{transform_indices = @transform_0, window_bounds = array<i64: 1, 3, 256>}, {transform_indices = @transform_1, window_bounds = array<i64: 1, 64, 3>}, {transform_indices = @transform_2, window_bounds = array<i64: 1, 4, 256>}, {transform_indices = @transform_3, window_bounds = array<i64: 1, 32, 64>}, {pipeline_mode = #tpu.pipeline_mode<synchronous>, transform_indices = @transform_4, window_bounds = array<i64: 32, 4>}, {pipeline_mode = #tpu.pipeline_mode<synchronous>, transform_indices = @transform_5, window_bounds = array<i64: 32, 1>}, {pipeline_mode = #tpu.pipeline_mode<synchronous>, transform_indices = @transform_6, window_bounds = array<i64: 16, 32>}, {pipeline_mode = #tpu.pipeline_mode<synchronous>, transform_indices = @transform_7, window_bounds = array<i64: 16, 1>}, {transform_indices = @transform_8, window_bounds = array<i64: 1, 16, 256>}]} {
    %c0 = arith.constant 0 : index
    %c0_0 = arith.constant 0 : index
    %c0_1 = arith.constant 0 : index
    %0 = vector.load %arg2[%c0, %c0_0, %c0_1] : memref<1x3x256xf32, #tpu.memory_space<vmem>>, vector<1x3x256xf32>
    %1 = vector.shape_cast %0 : vector<1x3x256xf32> to vector<3x256xf32>
    %c0_2 = arith.constant 0 : index
    %c0_3 = arith.constant 0 : index
    %c0_4 = arith.constant 0 : index
    %2 = vector.load %arg3[%c0_2, %c0_3, %c0_4] : memref<1x64x3xf32, #tpu.memory_space<vmem>>, vector<1x64x3xf32>
    %3 = vector.shape_cast %2 : vector<1x64x3xf32> to vector<64x3xf32>
    %4 = vector.extract_strided_slice %3 {offsets = [0, 0], sizes = [64, 1], strides = [1, 1]} : vector<64x3xf32> to vector<64x1xf32>
    %5 = vector.extract_strided_slice %1 {offsets = [0, 0], sizes = [1, 256], strides = [1, 1]} : vector<3x256xf32> to vector<1x256xf32>
    %6 = vector.broadcast %4 : vector<64x1xf32> to vector<64x256xf32>
    %7 = vector.broadcast %5 : vector<1x256xf32> to vector<64x256xf32>
    %8 = arith.subf %6, %7 : vector<64x256xf32>
    %9 = vector.extract_strided_slice %3 {offsets = [0, 1], sizes = [64, 1], strides = [1, 1]} : vector<64x3xf32> to vector<64x1xf32>
    %10 = vector.extract_strided_slice %1 {offsets = [1, 0], sizes = [1, 256], strides = [1, 1]} : vector<3x256xf32> to vector<1x256xf32>
    %11 = vector.broadcast %9 : vector<64x1xf32> to vector<64x256xf32>
    %12 = vector.broadcast %10 : vector<1x256xf32> to vector<64x256xf32>
    %13 = arith.subf %11, %12 : vector<64x256xf32>
    %14 = vector.extract_strided_slice %3 {offsets = [0, 2], sizes = [64, 1], strides = [1, 1]} : vector<64x3xf32> to vector<64x1xf32>
    %15 = vector.extract_strided_slice %1 {offsets = [2, 0], sizes = [1, 256], strides = [1, 1]} : vector<3x256xf32> to vector<1x256xf32>
    %16 = vector.broadcast %14 : vector<64x1xf32> to vector<64x256xf32>
    %17 = vector.broadcast %15 : vector<1x256xf32> to vector<64x256xf32>
    %18 = arith.subf %16, %17 : vector<64x256xf32>
    %19 = arith.mulf %8, %8 : vector<64x256xf32>
    %20 = arith.mulf %13, %13 : vector<64x256xf32>
    %21 = arith.addf %19, %20 : vector<64x256xf32>
    %22 = arith.mulf %18, %18 : vector<64x256xf32>
    %23 = arith.addf %21, %22 : vector<64x256xf32>
    %24 = tpu.iota {dimensions = array<i32: 0>} : vector<64x256xi32>
    %cst = arith.constant 0.000000e+00 : f32
    %25 = vector.broadcast %cst : f32 to vector<64x256xf32>
    %cst_5 = arith.constant 0.000000e+00 : f32
    %26 = vector.broadcast %cst_5 : f32 to vector<1x256xf32>
    %cst_6 = arith.constant dense<0x7F800000> : vector<256xf32>
    %27 = vector.multi_reduction <minimumf>, %23, %cst_6 [0] : vector<64x256xf32> to vector<256xf32>
    %28 = vector.shape_cast %27 : vector<256xf32> to vector<1x256xf32>
    %29 = vector.broadcast %28 : vector<1x256xf32> to vector<64x256xf32>
    %30 = arith.cmpf oeq, %23, %29 : vector<64x256xf32>
    %c64_i32 = arith.constant 64 : i32
    %31 = vector.broadcast %c64_i32 : i32 to vector<64x256xi32>
    %32 = arith.select %30, %24, %31 : vector<64x256xi1>, vector<64x256xi32>
    %cst_7 = arith.constant dense<2147483647> : vector<256xi32>
    %33 = vector.multi_reduction <minsi>, %32, %cst_7 [0] : vector<64x256xi32> to vector<256xi32>
    %34 = vector.shape_cast %33 : vector<256xi32> to vector<1x256xi32>
    %35 = vector.broadcast %34 : vector<1x256xi32> to vector<64x256xi32>
    %36 = arith.cmpi eq, %24, %35 : vector<64x256xi32>
    %cst_8 = arith.constant 1.000000e-10 : f32
    %37 = vector.broadcast %cst_8 : f32 to vector<1x256xf32>
    %38 = arith.maximumf %28, %37 : vector<1x256xf32>
    %cst_9 = arith.constant 1.000000e+00 : f32
    %39 = vector.broadcast %cst_9 : f32 to vector<1x256xf32>
    %40 = arith.divf %39, %38 : vector<1x256xf32>
    %41 = vector.shape_cast %40 : vector<1x256xf32> to vector<1x256xf32>
    %42 = vector.broadcast %41 : vector<1x256xf32> to vector<64x256xf32>
    %43 = arith.select %36, %42, %25 : vector<64x256xi1>, vector<64x256xf32>
    %44 = arith.addf %26, %40 : vector<1x256xf32>
    %cst_10 = arith.constant 1.000000e+30 : f32
    %45 = vector.broadcast %cst_10 : f32 to vector<64x256xf32>
    %46 = arith.select %36, %45, %23 : vector<64x256xi1>, vector<64x256xf32>
    %cst_11 = arith.constant dense<0x7F800000> : vector<256xf32>
    %47 = vector.multi_reduction <minimumf>, %46, %cst_11 [0] : vector<64x256xf32> to vector<256xf32>
    %48 = vector.shape_cast %47 : vector<256xf32> to vector<1x256xf32>
    %49 = vector.broadcast %48 : vector<1x256xf32> to vector<64x256xf32>
    %50 = arith.cmpf oeq, %46, %49 : vector<64x256xf32>
    %c64_i32_12 = arith.constant 64 : i32
    %51 = vector.broadcast %c64_i32_12 : i32 to vector<64x256xi32>
    %52 = arith.select %50, %24, %51 : vector<64x256xi1>, vector<64x256xi32>
    %cst_13 = arith.constant dense<2147483647> : vector<256xi32>
    %53 = vector.multi_reduction <minsi>, %52, %cst_13 [0] : vector<64x256xi32> to vector<256xi32>
    %54 = vector.shape_cast %53 : vector<256xi32> to vector<1x256xi32>
    %55 = vector.broadcast %54 : vector<1x256xi32> to vector<64x256xi32>
    %56 = arith.cmpi eq, %24, %55 : vector<64x256xi32>
    %cst_14 = arith.constant 1.000000e-10 : f32
    %57 = vector.broadcast %cst_14 : f32 to vector<1x256xf32>
    %58 = arith.maximumf %48, %57 : vector<1x256xf32>
    %cst_15 = arith.constant 1.000000e+00 : f32
    %59 = vector.broadcast %cst_15 : f32 to vector<1x256xf32>
    %60 = arith.divf %59, %58 : vector<1x256xf32>
    %61 = vector.shape_cast %60 : vector<1x256xf32> to vector<1x256xf32>
    %62 = vector.broadcast %61 : vector<1x256xf32> to vector<64x256xf32>
    %63 = arith.select %56, %62, %43 : vector<64x256xi1>, vector<64x256xf32>
    %64 = arith.addf %44, %60 : vector<1x256xf32>
    %cst_16 = arith.constant 1.000000e+30 : f32
    %65 = vector.broadcast %cst_16 : f32 to vector<64x256xf32>
    %66 = arith.select %56, %65, %46 : vector<64x256xi1>, vector<64x256xf32>
    %cst_17 = arith.constant dense<0x7F800000> : vector<256xf32>
    %67 = vector.multi_reduction <minimumf>, %66, %cst_17 [0] : vector<64x256xf32> to vector<256xf32>
    %68 = vector.shape_cast %67 : vector<256xf32> to vector<1x256xf32>
    %69 = vector.broadcast %68 : vector<1x256xf32> to vector<64x256xf32>
    %70 = arith.cmpf oeq, %66, %69 : vector<64x256xf32>
    %c64_i32_18 = arith.constant 64 : i32
    %71 = vector.broadcast %c64_i32_18 : i32 to vector<64x256xi32>
    %72 = arith.select %70, %24, %71 : vector<64x256xi1>, vector<64x256xi32>
    %cst_19 = arith.constant dense<2147483647> : vector<256xi32>
    %73 = vector.multi_reduction <minsi>, %72, %cst_19 [0] : vector<64x256xi32> to vector<256xi32>
    %74 = vector.shape_cast %73 : vector<256xi32> to vector<1x256xi32>
    %75 = vector.broadcast %74 : vector<1x256xi32> to vector<64x256xi32>
    %76 = arith.cmpi eq, %24, %75 : vector<64x256xi32>
    %cst_20 = arith.constant 1.000000e-10 : f32
    %77 = vector.broadcast %cst_20 : f32 to vector<1x256xf32>
    %78 = arith.maximumf %68, %77 : vector<1x256xf32>
    %cst_21 = arith.constant 1.000000e+00 : f32
    %79 = vector.broadcast %cst_21 : f32 to vector<1x256xf32>
    %80 = arith.divf %79, %78 : vector<1x256xf32>
    %81 = vector.shape_cast %80 : vector<1x256xf32> to vector<1x256xf32>
    %82 = vector.broadcast %81 : vector<1x256xf32> to vector<64x256xf32>
    %83 = arith.select %76, %82, %63 : vector<64x256xi1>, vector<64x256xf32>
    %84 = arith.addf %64, %80 : vector<1x256xf32>
    %cst_22 = arith.constant 1.000000e+00 : f32
    %85 = vector.broadcast %cst_22 : f32 to vector<1x256xf32>
    %86 = arith.divf %85, %84 : vector<1x256xf32>
    %c0_23 = arith.constant 0 : index
    %c0_24 = arith.constant 0 : index
    %c0_25 = arith.constant 0 : index
    %87 = vector.load %arg5[%c0_23, %c0_24, %c0_25] : memref<1x32x64xf32, #tpu.memory_space<vmem>>, vector<1x32x64xf32>
    %88 = vector.shape_cast %87 : vector<1x32x64xf32> to vector<32x64xf32>
    %cst_26 = arith.constant dense<0.000000e+00> : vector<32x256xf32>
    %89 = tpu.matmul %88, %83, %cst_26 {dimension_numbers = #tpu.dot_dimension_numbers<[1], [0], [0], [1], [0, 0, 1, 1], [], []>} : vector<32x64xf32>, vector<64x256xf32>, vector<32x256xf32> -> vector<32x256xf32>
    %90 = vector.broadcast %86 : vector<1x256xf32> to vector<32x256xf32>
    %91 = arith.mulf %89, %90 : vector<32x256xf32>
    %c0_27 = arith.constant 0 : index
    %c0_28 = arith.constant 0 : index
    %c0_29 = arith.constant 0 : index
    %92 = vector.load %arg4[%c0_27, %c0_28, %c0_29] : memref<1x4x256xf32, #tpu.memory_space<vmem>>, vector<1x4x256xf32>
    %93 = vector.shape_cast %92 : vector<1x4x256xf32> to vector<4x256xf32>
    %c0_30 = arith.constant 0 : index
    %c0_31 = arith.constant 0 : index
    %94 = vector.load %arg6[%c0_30, %c0_31] : memref<32x4xf32, #tpu.memory_space<vmem>>, vector<32x4xf32>
    %cst_32 = arith.constant dense<0.000000e+00> : vector<32x256xf32>
    %95 = tpu.matmul %94, %93, %cst_32 {dimension_numbers = #tpu.dot_dimension_numbers<[1], [0], [0], [1], [0, 0, 1, 1], [], []>} : vector<32x4xf32>, vector<4x256xf32>, vector<32x256xf32> -> vector<32x256xf32>
    %96 = arith.addf %91, %95 : vector<32x256xf32>
    %c0_33 = arith.constant 0 : index
    %c0_34 = arith.constant 0 : index
    %97 = vector.load %arg7[%c0_33, %c0_34] : memref<32x1xf32, #tpu.memory_space<vmem>>, vector<32x1xf32>
    %98 = vector.broadcast %97 : vector<32x1xf32> to vector<32x256xf32>
    %99 = arith.addf %96, %98 : vector<32x256xf32>
    %cst_35 = arith.constant 0.000000e+00 : f32
    %100 = vector.broadcast %cst_35 : f32 to vector<32x256xf32>
    %101 = arith.maximumf %99, %100 : vector<32x256xf32>
    %c0_36 = arith.constant 0 : index
    %c0_37 = arith.constant 0 : index
    %102 = vector.load %arg8[%c0_36, %c0_37] : memref<16x32xf32, #tpu.memory_space<vmem>>, vector<16x32xf32>
    %cst_38 = arith.constant dense<0.000000e+00> : vector<16x256xf32>
    %103 = tpu.matmul %102, %101, %cst_38 {dimension_numbers = #tpu.dot_dimension_numbers<[1], [0], [0], [1], [0, 0, 1, 1], [], []>} : vector<16x32xf32>, vector<32x256xf32>, vector<16x256xf32> -> vector<16x256xf32>
    %c0_39 = arith.constant 0 : index
    %c0_40 = arith.constant 0 : index
    %104 = vector.load %arg9[%c0_39, %c0_40] : memref<16x1xf32, #tpu.memory_space<vmem>>, vector<16x1xf32>
    %105 = vector.broadcast %104 : vector<16x1xf32> to vector<16x256xf32>
    %106 = arith.addf %103, %105 : vector<16x256xf32>
    %cst_41 = arith.constant 0.000000e+00 : f32
    %107 = vector.broadcast %cst_41 : f32 to vector<16x256xf32>
    %108 = arith.maximumf %106, %107 : vector<16x256xf32>
    %c0_42 = arith.constant 0 : index
    %c0_43 = arith.constant 0 : index
    %c0_44 = arith.constant 0 : index
    %109 = vector.load %arg10[%c0_42, %c0_43, %c0_44] : memref<1x16x256xf32, #tpu.memory_space<vmem>>, vector<1x16x256xf32>
    %110 = vector.shape_cast %109 : vector<1x16x256xf32> to vector<16x256xf32>
    %111 = vector.shape_cast %108 : vector<16x256xf32> to vector<1x16x256xf32>
    tpu.vector_store %arg10[%c0_42, %c0_43, %c0_44], %111 {strides = array<i32>} : memref<1x16x256xf32, #tpu.memory_space<vmem>>, vector<1x16x256xf32>,
    return
  }
  func.func @transform_0(%arg0: i32, %arg1: i32) -> (i32, i32, i32) {
    %c0_i32 = arith.constant 0 : i32
    %c0_i32_0 = arith.constant 0 : i32
    return %arg0, %c0_i32, %arg1 : i32, i32, i32
  }
  func.func @transform_1(%arg0: i32, %arg1: i32) -> (i32, i32, i32) {
    %c0_i32 = arith.constant 0 : i32
    %c0_i32_0 = arith.constant 0 : i32
    %c0_i32_1 = arith.constant 0 : i32
    return %arg0, %c0_i32, %c0_i32_0 : i32, i32, i32
  }
  func.func @transform_2(%arg0: i32, %arg1: i32) -> (i32, i32, i32) {
    %c0_i32 = arith.constant 0 : i32
    %c0_i32_0 = arith.constant 0 : i32
    return %arg0, %c0_i32, %arg1 : i32, i32, i32
  }
  func.func @transform_3(%arg0: i32, %arg1: i32) -> (i32, i32, i32) {
    %c0_i32 = arith.constant 0 : i32
    %c0_i32_0 = arith.constant 0 : i32
    %c0_i32_1 = arith.constant 0 : i32
    return %arg0, %c0_i32, %c0_i32_0 : i32, i32, i32
  }
  func.func @transform_4(%arg0: i32, %arg1: i32) -> (i32, i32) {
    %c0_i32 = arith.constant 0 : i32
    %c0_i32_0 = arith.constant 0 : i32
    %c0_i32_1 = arith.constant 0 : i32
    return %c0_i32, %c0_i32_0 : i32, i32
  }
  func.func @transform_5(%arg0: i32, %arg1: i32) -> (i32, i32) {
    %c0_i32 = arith.constant 0 : i32
    %c0_i32_0 = arith.constant 0 : i32
    %c0_i32_1 = arith.constant 0 : i32
    return %c0_i32, %c0_i32_0 : i32, i32
  }
  func.func @transform_6(%arg0: i32, %arg1: i32) -> (i32, i32) {
    %c0_i32 = arith.constant 0 : i32
    %c0_i32_0 = arith.constant 0 : i32
    %c0_i32_1 = arith.constant 0 : i32
    return %c0_i32, %c0_i32_0 : i32, i32
  }
  func.func @transform_7(%arg0: i32, %arg1: i32) -> (i32, i32) {
    %c0_i32 = arith.constant 0 : i32
    %c0_i32_0 = arith.constant 0 : i32
    %c0_i32_1 = arith.constant 0 : i32
    return %c0_i32, %c0_i32_0 : i32, i32
  }
  func.func @transform_8(%arg0: i32, %arg1: i32) -> (i32, i32, i32) {
    %c0_i32 = arith.constant 0 : i32
    %c0_i32_0 = arith.constant 0 : i32
    return %arg0, %c0_i32, %arg1 : i32, i32, i32
  }
}

</mosaic_0001>

<bundles_post_ra>
// kernel: tpu_custom_call.1
= control target key start
LH: loop header
LB: loop body
LE: loop exit
PB: predicated region body
PF: predicated region fallthrough
CT: control target
= control target key end

     0   :  { %13 = vsyncpa [#allocation3], 0  ;;  %s2995_s0 = inlined_call_operand.vmem [shape: f32[2,3,256], index: 0, kind: input, shape index: {}]   ;;  %s2996_s1 = inlined_call_operand.vmem [shape: f32[2,64,3], index: 1, kind: input, shape index: {}]   ;;  %s2997_s2 = inlined_call_operand.vmem [shape: f32[2,4,256], index: 2, kind: input, shape index: {}]   ;;  %s2998_s3 = inlined_call_operand.vmem [shape: f32[2,32,64], index: 3, kind: input, shape index: {}]   ;;  %s2999_s4 = inlined_call_operand.vmem [shape: f32[32,4], index: 4, kind: input, shape index: {}]   ;;  %s3000_s5 = inlined_call_operand.vmem [shape: f32[32,1], index: 5, kind: input, shape index: {}]   ;;  %s3001_s6 = inlined_call_operand.vmem [shape: f32[16,32], index: 6, kind: input, shape index: {}]   ;;  %s3002_s7 = inlined_call_operand.vmem [shape: f32[16,1], index: 7, kind: input, shape index: {}]   ;;  %s3003_s8 = inlined_call_operand.hbm [shape: f32[2,16,256], index: 8, kind: output, shape index: {}]  }
   0x1   :  { %15 = vsyncpa [#allocation3 + $0x1], 0  ;;  %s1986_s27 = smov 0   ;;  %s1988_s28 = smov 0  }
   0x2   :  { %s1990_s29 = smov 0   ;;  %s1992_s30 = smov 0  }
   0x3   :  { %s1994_s9 = smov 0   ;;  %s1996_s10 = smov 0  }
   0x4 LB: > { %s1703_s11 = sadd.s32 4294967295, %s1932_s10   ;;  %s1704_s12 = sadd.s32 4294967294, %s1932_s10   ;;  %s1932_s10 = sphi %s1996_s10, %s21_s10   ;;  %s1928_s9 = sphi %s1994_s9, %s3010_s9   ;;  %s1924_s30 = sphi %s1992_s30, %s3009_s30   ;;  %s1920_s29 = sphi %s1990_s29, %s3008_s29   ;;  %s1916_s28 = sphi %s1988_s28, %s3007_s28   ;;  %s1912_s27 = sphi %s1986_s27, %s3006_s27  }
   0x5   : > { %s33_s13 = sadd.s32 1, %s1928_s9  ;;  %s234_s14 = sadd.s32 1, %s1920_s29 }
   0x6   : > { %p35_p0 = scmp.ge.s32.totalorder %s33_s13, 2  ;;  %p244_p1 = scmp.ne.s32.totalorder %s1920_s29, %s1916_s28 }
   0x7   : > { %p245_p2 = scmp.eq.s32.totalorder %s1703_s11, 1  ;;  %p250_p3 = scmp.ne.s32.totalorder %s1916_s28, %s1912_s27 }
   0x8   : > { %s3012_s13 = smov (%p35_p0, %s33_s13), 0  ;;  %p251_p5 = scmp.eq.s32.totalorder %s1704_s12, 1 }
   0x9   : > { %p2026_p4 = por %p245_p2, %p244_p1  ;;  %s229_s16 = ssub.s32 %s1928_s9, %s3012_s13 }
   0xa   : > { %p1707_p6 = scmp.ge.s32.totalorder %s1932_s10, 1  ;;  %p232_p7 = scmp.eq.s32.totalorder %s229_s16, 0 }
   0xb   : > { %p2033_p8 = por %p251_p5, %p250_p3  ;;  %p323_p9 = scmp.lt.s32.totalorder %s1932_s10, 3 }
   0xc   : > { %s2039_s18 = scalar_select %p232_p7, %s1920_s29, %s234_s14  }
   0xd   : > { %p324_p10 = pnand %p1707_p6, %p323_p9 }
   0xe   : > { %p381_p11 = scmp.lt.s32.totalorder (!%p324_p10), %s1924_s30, 1  ;;  %v1934_v0 = vmov (!%p324_p10), 1   ;;  %v1935_v1 = vmov (!%p324_p10), 0   ;;  %v1936_v9 = vmov (!%p324_p10), 2   ;;  %v461_v17 = vlaneseq (!%p324_p10)  ;;  %s377_s25 = sand.u32 (!%p324_p10), 1, %s1916_s28  }
   0xf   : > { %327 = sbr.rel (%p324_p10) target bundleno = 872 (0x368), region = 52  ;;  %1825 = vset.pattern.permute.xlu0 (!%p324_p10), %v1934_v0  ;;  %1824 = vset.pattern.permute.xlu1 (!%p324_p10), %v1935_v1  ;;  %s1708_s26 = sshll.u32 (!%p324_p10), %s377_s25, 5 }
  0x10   : > { %v2060_v20 = vshrl.u32 (!%p324_p10), %v461_v17, 7 }
  0x12   : > { %v529_v21 = vsub.s32 (!%p324_p10), 1, %v2060_v20  ;;  %v533_v22 = vsub.s32 (!%p324_p10), 5, %v2060_v20  ;;  %v463_v24 = vsub.s32 (!%p324_p10), 0, %v2060_v20  ;;  %v467_v25 = vsub.s32 (!%p324_p10), 4, %v2060_v20 }
  0x13   : > { %v595_v36 = vsub.s32 (!%p324_p10), 2, %v2060_v20  ;;  %v599_v37 = vsub.s32 (!%p324_p10), 6, %v2060_v20 }
  0x16   : > { %s2043_s19 = scalar_select %p381_p11, %s1924_s30, 1 }
  0x18   : > { %s1735_s20 = sshll.u32 %s2043_s19, 6  ;;  %s1734_s24 = sshll.u32 %s2043_s19, 3 }
  0x19   : > { %s2049_s23 = scalar_lea.vmem %s2996_s1, %s1735_s20  ;;  %s388_s11 = scalar_lea.vmem %s2995_s0, %s1734_s24 }
  0x1a   : > { %v414_v2 = vld [vmem:[%s2049_s23 + $0x10] sm:$0xff]  ;;  %v412_v3 = vld [vmem:[%s2049_s23] sm:$0xff]  ;;  %v415_v4 = vld [vmem:[%s2049_s23 + $0x18] sm:$0xff]  ;;  %s403_s16 = scalar_lea.vmem %s2997_s2, %s1734_s24  ;;  %s1737_s14 = sshll.u32 %s2043_s19, 5 }
  0x1b   : > { %432 = vperm.xlu1 %1824, %v414_v2   ;;  %496 = vperm.xlu0 %1825, %v412_v3   ;;  %v413_v5 = vld [vmem:[%s2049_s23 + $0x8] sm:$0xff]  ;;  %v416_v7 = vld [vmem:[%s2049_s23 + $0x20] sm:$0xff]  ;;  %v419_v8 = vld [vmem:[%s2049_s23 + $0x38] sm:$0xff]  ;;  %s409_s21 = scalar_lea.vmem %s2998_s3, %s1737_s14  ;;  %s1738_s14 = sshll.u32 %s1924_s30, 9 }
  0x1c   : > { %v417_v6 = vld [vmem:[%s2049_s23 + $0x28] sm:$0xff]  ;;  %v418_v10 = vld [vmem:[%s2049_s23 + $0x30] sm:$0xff]  ;;  %v411_v26 = vld [vmem:[%s388_s11] sm:$0x77]  ;;  %s379_s11 = scalar_lea.vmem [#allocation2], %s1708_s26  ;;  %s2949_s19 = scalar_lea.sflag [#allocation3], %s377_s25 }
  0x1d   : > { %v530_v28 = vrot.slane %v411_v26, %v529_v21  ;;  %v534_v29 = vrot.slane %v411_v26, %v533_v22  ;;  %v464_v31 = vrot.slane %v411_v26, %v463_v24  ;;  %v468_v32 = vrot.slane %v411_v26, %v467_v25  ;;  %s1582_s12 = sshll.u32 %s379_s11, 4  ;;  %s1938_s30 = smov [#allocation2]   ;;  %s2942_s12 = int_to_ptr.vmem [resolvable:$true] %s1582_s12 }
  0x1e   : > { %v596_v49 = vrot.slane %v411_v26, %v595_v36  ;;  %v600_v50 = vrot.slane %v411_v26, %v599_v37  ;;  %s1854_s22 = scalar_lea.vmem %s2942_s12, 512  ;;  %s1858_s23 = sshll.u32 %s1938_s30, 4  ;;  %s1859_s23 = int_to_ptr.vmem [resolvable:$false] %s1858_s23 }
  0x1f   : > { %437 = vperm.xlu1 %1824, %v415_v4   ;;  %508 = vperm.xlu0 %1825, %v415_v4   ;;  %v2075_v33 = vrot.slane %v530_v28, %v529_v21  ;;  %v2077_v34 = vrot.slane %v534_v29, %v529_v21  ;;  %v2085_v39 = vrot.slane %v464_v31, %v463_v24  ;;  %p1855_p12 = scmp.ne.s32.totalorder %s2942_s12, %s1854_s22  ;;  %s1860_s24 = scalar_lea.vmem %s1859_s23, 1024 }
  0x20   : > { %v2087_v40 = vrot.slane %v468_v32, %v463_v24  ;;  %p1861_p1 = scmp.lt.s32.totalorder %s2942_s12, %s1859_s23  ;;  %p1862_p2 = scmp.lt.s32.totalorder %s1860_s24, %s1854_s22 }
  0x21   : > { %p1856_p13 = pnand %p1855_p12, %p2026_p4 }
  0x22   : > { %p1863_p3 = por %p1862_p2, %p1861_p1 }
  0x23   : > { %1826 = vset.pattern.permute.xlu1 %v1934_v0  ;;  %1827 = vset.pattern.permute.xlu0 %v1935_v1  ;;  %p1857_p0 = pneg %p1856_p13 }
  0x24   : > { %500 = vperm.xlu1 %1826, %v413_v5   ;;  %422 = vperm.xlu0 %1827, %v412_v3  }
  0x25   : > { %p1864_p5 = pnand %p1863_p3, %p1857_p0 }
  0x28   : > { %504 = vperm.xlu1 %1826, %v414_v2   ;;  %427 = vperm.xlu0 %1827, %v413_v5  }
  0x2c   : > { %1828 = vset.pattern.permute.xlu1 %v1935_v1  ;;  %447 = vperm.xlu0 %1827, %v417_v6  }
  0x2d   : > { %442 = vperm.xlu1 %1828, %v416_v7  }
  0x30   : > { %457 = vperm.xlu0 %1827, %v419_v8  }
  0x31   : > { %1829 = vset.pattern.permute.xlu1 %v1934_v0 }
  0x32   : > { %512 = vperm.xlu1 %1829, %v416_v7  }
  0x34   : > { %1832 = vset.pattern.permute.xlu0 %v1936_v9 }
  0x35   : > { %562 = vperm.xlu0 %1832, %v412_v3  }
  0x36   : > { %516 = vperm.xlu1 %1829, %v417_v6  }
  0x39   : > { %574 = vperm.xlu0 %1832, %v415_v4  }
  0x3a   : > { %1830 = vset.pattern.permute.xlu1 %v1936_v9 }
  0x3b   : > { %566 = vperm.xlu1 %1830, %v413_v5  }
  0x3d   : > { %578 = vperm.xlu0 %1832, %v416_v7   ;;  %v2105_v7 = vrot.slane %v596_v49, %v595_v36 }
  0x3f   : > { %570 = vperm.xlu1 %1830, %v414_v2  }
  0x41   : > { %590 = vperm.xlu0 %1832, %v419_v8  }
  0x43   : > { %1831 = vset.pattern.permute.xlu1 %v1935_v1 }
  0x44   : > { %452 = vperm.xlu1 %1831, %v418_v10  }
  0x45   : > { %1836 = vset.pattern.permute.xlu0 %v1935_v1 }
  0x48   : > { %1833 = vset.pattern.permute.xlu1 %v1934_v0 }
  0x49   : > { %520 = vperm.xlu1 %1833, %v418_v10  }
  0x4d   : > { %524 = vperm.xlu1 %1833, %v419_v8   ;;  %v2107_v8 = vrot.slane %v600_v50, %v595_v36 }
  0x51   : > { %1834 = vset.pattern.permute.xlu1 %v1936_v9 }
  0x52   : > { %582 = vperm.xlu1 %1834, %v417_v6  }
  0x56   : > { %586 = vperm.xlu1 %1834, %v418_v10  }
  0x5a   : > { %1835 = vset.pattern.permute.xlu1 %v1935_v1 }
  0x9a   : > { %v433_v11 = vpop.permute.xlu1 %432  ;;  %v497_v12 = vpop.permute.xlu0 %496 }
  0x9b   : > { %v545_v41 = vsub.f32 %v497_v12, %v2075_v33  ;;  %v546_v42 = vsub.f32 %v497_v12, %v2077_v34  ;;  %v483_v51 = vsub.f32 %v433_v11, %v2085_v39  ;;  %v484_v52 = vsub.f32 %v433_v11, %v2087_v40 }
  0x9d   : > { %v643_v56 = vmul.f32 %v545_v41, %v545_v41  ;;  %v644_v57 = vmul.f32 %v546_v42, %v546_v42  ;;  %v631_v10 = vmul.f32 %v483_v51, %v483_v51  ;;  %v632_v11 = vmul.f32 %v484_v52, %v484_v52 }
  0x9e   : > { %v438_v13 = vpop.permute.xlu1 %437  ;;  %v509_v14 = vpop.permute.xlu0 %508 }
  0x9f   : > { %v485_v43 = vsub.f32 %v438_v13, %v2085_v39  ;;  %v486_v44 = vsub.f32 %v438_v13, %v2087_v40  ;;  %v551_v45 = vsub.f32 %v509_v14, %v2075_v33  ;;  %v552_v46 = vsub.f32 %v509_v14, %v2077_v34 }
  0xa1   : > { %v633_v61 = vmul.f32 %v485_v43, %v485_v43  ;;  %v634_v62 = vmul.f32 %v486_v44, %v486_v44  ;;  %v649_v63 = vmul.f32 %v551_v45, %v551_v45  ;;  %v650_v0 = vmul.f32 %v552_v46, %v552_v46 }
  0xa3   : > { %v501_v15 = vpop.permute.xlu1 %500  ;;  %v423_v16 = vpop.permute.xlu0 %422  ;;  %v665_v14 = vadd.f32 %v649_v63, %v633_v61 }
  0xa4   : > { %v479_v47 = vsub.f32 %v423_v16, %v2085_v39  ;;  %v480_v48 = vsub.f32 %v423_v16, %v2087_v40  ;;  %v547_v1 = vsub.f32 %v501_v15, %v2075_v33  ;;  %v548_v2 = vsub.f32 %v501_v15, %v2077_v34 }
  0xa5   : > { %v666_v16 = vadd.f32 %v650_v0, %v634_v62 }
  0xa6   : > { %v627_v3 = vmul.f32 %v479_v47, %v479_v47  ;;  %v628_v4 = vmul.f32 %v480_v48, %v480_v48  ;;  %v645_v15 = vmul.f32 %v547_v1, %v547_v1 }
  0xa7   : > { %v505_v18 = vpop.permute.xlu1 %504  ;;  %v428_v19 = vpop.permute.xlu0 %427 }
  0xa8   : > { %v549_v53 = vsub.f32 %v505_v18, %v2075_v33  ;;  %v550_v54 = vsub.f32 %v505_v18, %v2077_v34  ;;  %v481_v58 = vsub.f32 %v428_v19, %v2085_v39  ;;  %v482_v59 = vsub.f32 %v428_v19, %v2087_v40 }
  0xa9   : > { %v646_v19 = vmul.f32 %v548_v2, %v548_v2  ;;  %v659_v21 = vadd.f32 %v643_v56, %v627_v3  ;;  %v660_v22 = vadd.f32 %v644_v57, %v628_v4 }
  0xaa   : > { %v647_v5 = vmul.f32 %v549_v53, %v549_v53  ;;  %v648_v6 = vmul.f32 %v550_v54, %v550_v54  ;;  %v629_v12 = vmul.f32 %v481_v58, %v481_v58  ;;  %v630_v13 = vmul.f32 %v482_v59, %v482_v59 }
  0xab   : > { %v448_v27 = vpop.permute.xlu0 %447 }
  0xac   : > { %v2069_v23 = vpop.permute.xlu1 %442  ;;  %v489_v17 = vsub.f32 %v448_v27, %v2085_v39  ;;  %v490_v18 = vsub.f32 %v448_v27, %v2087_v40  ;;  %v663_v25 = vadd.f32 %v647_v5, %v631_v10  ;;  %v664_v26 = vadd.f32 %v648_v6, %v632_v11 }
  0xad   : > { %v487_v28 = vsub.f32 %v2069_v23, %v2085_v39  ;;  %v488_v29 = vsub.f32 %v2069_v23, %v2087_v40  ;;  %v661_v31 = vadd.f32 %v645_v15, %v629_v12  ;;  %v662_v32 = vadd.f32 %v646_v19, %v630_v13 }
  0xae   : > { %v637_v41 = vmul.f32 %v489_v17, %v489_v17  ;;  %v638_v42 = vmul.f32 %v490_v18, %v490_v18 }
  0xaf   : > { %v2079_v35 = vpop.permute.xlu0 %457  ;;  %v635_v48 = vmul.f32 %v487_v28, %v487_v28  ;;  %v636_v49 = vmul.f32 %v488_v29, %v488_v29 }
  0xb0   : > { %v493_v45 = vsub.f32 %v2079_v35, %v2085_v39  ;;  %v494_v23 = vsub.f32 %v2079_v35, %v2087_v40 }
  0xb1   : > { %v2073_v30 = vpop.permute.xlu1 %512 }
  0xb2   : > { %v553_v36 = vsub.f32 %v2073_v30, %v2075_v33  ;;  %v554_v27 = vsub.f32 %v2073_v30, %v2077_v34  ;;  %v642_v61 = vmul.f32 %v494_v23, %v494_v23 }
  0xb4   : > { %v563_v60 = vpop.permute.xlu0 %562  ;;  %v651_v51 = vmul.f32 %v553_v36, %v553_v36  ;;  %v652_v52 = vmul.f32 %v554_v27, %v554_v27 }
  0xb5   : > { %v2083_v38 = vpop.permute.xlu1 %516  ;;  %v611_v46 = vsub.f32 %v563_v60, %v2105_v7  ;;  %v612_v47 = vsub.f32 %v563_v60, %v2107_v8  ;;  %v641_v60 = vmul.f32 %v493_v45, %v493_v45 }
  0xb6   : > { %v555_v53 = vsub.f32 %v2083_v38, %v2075_v33  ;;  %v556_v54 = vsub.f32 %v2083_v38, %v2077_v34  ;;  %v667_v4 = vadd.f32 %v651_v51, %v635_v48  ;;  %v668_v38 = vadd.f32 %v652_v52, %v636_v49 }
  0xb7   : > { %v675_v62 = vmul.f32 %v611_v46, %v611_v46  ;;  %v676_v63 = vmul.f32 %v612_v47, %v612_v47 }
  0xb8   : > { %v575_v24 = vpop.permute.xlu0 %574  ;;  %v653_v5 = vmul.f32 %v555_v53, %v555_v53  ;;  %v654_v6 = vmul.f32 %v556_v54, %v556_v54 }
  0xb9   : > { %v617_v30 = vsub.f32 %v575_v24, %v2105_v7  ;;  %v618_v50 = vsub.f32 %v575_v24, %v2107_v8  ;;  %v2141_v17 = vadd.f32 %v675_v62, %v659_v21  ;;  %v2143_v18 = vadd.f32 %v676_v63, %v660_v22 }
  0xba   : > { %v567_v55 = vpop.permute.xlu1 %566  ;;  %v669_v36 = vadd.f32 %v653_v5, %v637_v41 }
  0xbb   : > { %v613_v43 = vsub.f32 %v567_v55, %v2105_v7  ;;  %v614_v44 = vsub.f32 %v567_v55, %v2107_v8  ;;  %v681_v0 = vmul.f32 %v617_v30, %v617_v30  ;;  %v682_v1 = vmul.f32 %v618_v50, %v618_v50 }
  0xbc   : > { %v579_v55 = vpop.permute.xlu0 %578 }
  0xbd   : > { %v677_v35 = vmul.f32 %v613_v43, %v613_v43  ;;  %v678_v56 = vmul.f32 %v614_v44, %v614_v44  ;;  %v619_v2 = vsub.f32 %v579_v55, %v2105_v7  ;;  %v620_v3 = vsub.f32 %v579_v55, %v2107_v8 }
  0xbe   : > { %v571_v9 = vpop.permute.xlu1 %570  ;;  %v2147_v24 = vadd.f32 %v681_v0, %v665_v14  ;;  %v2149_v28 = vadd.f32 %v682_v1, %v666_v16 }
  0xbf   : > { %v615_v57 = vsub.f32 %v571_v9, %v2105_v7  ;;  %v616_v58 = vsub.f32 %v571_v9, %v2107_v8  ;;  %v2137_v10 = vadd.f32 %v677_v35, %v661_v31  ;;  %v2139_v11 = vadd.f32 %v678_v56, %v662_v32 }
  0xc0   : > { %v683_v29 = vmul.f32 %v619_v2, %v619_v2  ;;  %v684_v31 = vmul.f32 %v620_v3, %v620_v3  ;;  %v670_v32 = vadd.f32 %v654_v6, %v638_v42  ;;  %v591_v16 = vpop.permute.xlu0 %590 }
  0xc1   : > { %v679_v9 = vmul.f32 %v615_v57, %v615_v57  ;;  %v680_v12 = vmul.f32 %v616_v58, %v616_v58  ;;  %v717_v21 = vmin.f32 %v2137_v10, %v2147_v24  ;;  %v730_v22 = vmin.f32 %v2139_v11, %v2149_v28 }
  0xc2   : > { %v2163_v46 = vadd.f32 %v683_v29, %v667_v4  ;;  %v626_v30 = vsub.f32 %v591_v16, %v2107_v8 }
  0xc3   : > { %v453_v37 = vpop.permute.xlu1 %452  ;;  %v2157_v44 = vadd.f32 %v679_v9, %v663_v25  ;;  %v2159_v14 = vadd.f32 %v680_v12, %v664_v26  ;;  %v625_v26 = vsub.f32 %v591_v16, %v2105_v7 }
  0xc4   : > { %v491_v45 = vsub.f32 %v453_v37, %v2085_v39  ;;  %v492_v41 = vsub.f32 %v453_v37, %v2087_v40  ;;  %v690_v0 = vmul.f32 %v626_v30, %v626_v30 }
  0xc5   : > { %v716_v39 = vmin.f32 %v2141_v17, %v2157_v44  ;;  %v729_v40 = vmin.f32 %v2143_v18, %v2159_v14  ;;  %v689_v63 = vmul.f32 %v625_v26, %v625_v26  ;;  %v2220_v26 = vadd.s32 56, %v2060_v20 }
  0xc6   : > { %v639_v51 = vmul.f32 %v491_v45, %v491_v45  ;;  %v640_v52 = vmul.f32 %v492_v41, %v492_v41  ;;  %v2198_v41 = vadd.s32 8, %v2060_v20 }
  0xc8   : > { %v521_v59 = vpop.permute.xlu1 %520 }
  0xc9   : > { %v557_v27 = vsub.f32 %v521_v59, %v2075_v33  ;;  %v558_v43 = vsub.f32 %v521_v59, %v2077_v34 }
  0xcb   : > { %v655_v25 = vmul.f32 %v557_v27, %v557_v27  ;;  %v656_v49 = vmul.f32 %v558_v43, %v558_v43 }
  0xcc   : > { %v525_v13 = vpop.permute.xlu1 %524 }
  0xcd   : > { %v559_v15 = vsub.f32 %v525_v13, %v2075_v33  ;;  %v560_v19 = vsub.f32 %v525_v13, %v2077_v34  ;;  %v2165_v34 = vadd.f32 %v684_v31, %v668_v38  ;;  %v671_v59 = vadd.f32 %v655_v25, %v639_v51 }
  0xce   : > { %v672_v62 = vadd.f32 %v656_v49, %v640_v52  ;;  %v2214_v25 = vadd.s32 40, %v2060_v20  ;;  %v2217_v49 = vadd.s32 48, %v2060_v20 }
  0xcf   : > { %v657_v42 = vmul.f32 %v559_v15, %v559_v15  ;;  %v658_v23 = vmul.f32 %v560_v19, %v560_v19  ;;  %v731_v4 = vmin.f32 %v729_v40, %v2165_v34 }
  0xd1   : > { %v583_v33 = vpop.permute.xlu1 %582  ;;  %v673_v53 = vadd.f32 %v657_v42, %v641_v60  ;;  %v674_v54 = vadd.f32 %v658_v23, %v642_v61  ;;  %v718_v61 = vmin.f32 %v716_v39, %v2163_v46  ;;  %v2201_v42 = vadd.s32 16, %v2060_v20 }
  0xd2   : > { %v621_v47 = vsub.f32 %v583_v33, %v2105_v7  ;;  %v622_v48 = vsub.f32 %v583_v33, %v2107_v8  ;;  %v2204_v23 = vadd.s32 24, %v2060_v20 }
  0xd3   : > { %v2185_v38 = vadd.f32 %v689_v63, %v673_v53  ;;  %v2187_v5 = vadd.f32 %v690_v0, %v674_v54 }
  0xd4   : > { %v685_v37 = vmul.f32 %v621_v47, %v621_v47  ;;  %v686_v50 = vmul.f32 %v622_v48, %v622_v48  ;;  %v2211_v48 = vadd.s32 32, %v2060_v20 }
  0xd5   : > { %v587_v55 = vpop.permute.xlu1 %586 }
  0xd6   : > { %v2175_v35 = vadd.f32 %v685_v37, %v669_v36  ;;  %v2177_v56 = vadd.f32 %v686_v50, %v670_v32  ;;  %v623_v57 = vsub.f32 %v587_v55, %v2105_v7  ;;  %v624_v58 = vsub.f32 %v587_v55, %v2107_v8 }
  0xd8   : > { %v719_v1 = vmin.f32 %v717_v21, %v2175_v35  ;;  %v732_v2 = vmin.f32 %v730_v22, %v2177_v56  ;;  %v687_v3 = vmul.f32 %v623_v57, %v623_v57  ;;  %v688_v60 = vmul.f32 %v624_v58, %v624_v58 }
  0xda   : > { %v2189_v7 = vadd.f32 %v687_v3, %v671_v59  ;;  %v2191_v8 = vadd.f32 %v688_v60, %v672_v62  ;;  %v721_v6 = vmin.f32 %v719_v1, %v2185_v38  ;;  %v734_v9 = vmin.f32 %v732_v2, %v2187_v5 }
  0xdc   : > { %v720_v12 = vmin.f32 %v718_v61, %v2189_v7  ;;  %v733_v13 = vmin.f32 %v731_v4, %v2191_v8 }
  0xde   : > { %v722_v15 = vmin.f32 %v720_v12, %v721_v6  ;;  %v735_v19 = vmin.f32 %v733_v13, %v734_v9 }
  0xe0   : > { %v723_v29 = vrot.slane %v722_v15, 4  ;;  %v736_v31 = vrot.slane %v735_v19, 4 }
  0xe2   : > { %v724_v36 = vmin.f32 %v722_v15, %v723_v29  ;;  %v737_v32 = vmin.f32 %v735_v19, %v736_v31 }
  0xe4   : > { %v725_v27 = vrot.slane %v724_v36, 2  ;;  %v738_v43 = vrot.slane %v737_v32, 2 }
  0xe6   : > { %v726_v21 = vmin.f32 %v724_v36, %v725_v27  ;;  %v739_v22 = vmin.f32 %v737_v32, %v738_v43 }
  0xe8   : > { %v727_v16 = vrot.slane %v726_v21, 1  ;;  %v740_v45 = vrot.slane %v739_v22, 1 }
  0xea   : > { %v2206_v33 = vmin.f32 %v726_v21, %v727_v16  ;;  %v2208_v47 = vmin.f32 %v739_v22, %v740_v45 }
  0xec   : > { %vm742_vm0 = vcmp.eq.f32.partialorder %v2141_v17, %v2206_v33  ;;  %vm743_vm1 = vcmp.eq.f32.partialorder %v2143_v18, %v2208_v47  ;;  %vm744_vm2 = vcmp.eq.f32.partialorder %v2137_v10, %v2206_v33  ;;  %vm745_vm3 = vcmp.eq.f32.partialorder %v2139_v11, %v2208_v47 }
  0xed   : > { %vm746_vm4 = vcmp.eq.f32.partialorder %v2157_v44, %v2206_v33  ;;  %vm747_vm5 = vcmp.eq.f32.partialorder %v2159_v14, %v2208_v47  ;;  %vm748_vm6 = vcmp.eq.f32.partialorder %v2147_v24, %v2206_v33  ;;  %vm749_vm7 = vcmp.eq.f32.partialorder %v2149_v28, %v2208_v47 }
  0xee   : > { %vm750_vm8 = vcmp.eq.f32.partialorder %v2163_v46, %v2206_v33  ;;  %vm751_vm9 = vcmp.eq.f32.partialorder %v2165_v34, %v2208_v47  ;;  %vm752_vm10 = vcmp.eq.f32.partialorder %v2175_v35, %v2206_v33  ;;  %vm753_vm11 = vcmp.eq.f32.partialorder %v2177_v56, %v2208_v47 }
  0xef   : > { %vm754_vm12 = vcmp.eq.f32.partialorder %v2189_v7, %v2206_v33  ;;  %vm755_vm13 = vcmp.eq.f32.partialorder %v2191_v8, %v2208_v47  ;;  %vm756_vm14 = vcmp.eq.f32.partialorder %v2185_v38, %v2206_v33  ;;  %vm757_vm15 = vcmp.eq.f32.partialorder %v2187_v5, %v2208_v47 }
  0xf0   : > { %v758_v30 = vsel %vm742_vm0, %v2060_v20, 64  ;;  %v759_v39 = vsel %vm743_vm1, %v2060_v20, 64  ;;  %v760_v40 = vsel %vm744_vm2, %v2198_v41, 64  ;;  %v761_v37 = vsel %vm745_vm3, %v2198_v41, 64 }
  0xf1   : > { %v762_v50 = vsel %vm746_vm4, %v2201_v42, 64  ;;  %v763_v51 = vsel %vm747_vm5, %v2201_v42, 64  ;;  %v764_v52 = vsel %vm748_vm6, %v2204_v23, 64  ;;  %v765_v53 = vsel %vm749_vm7, %v2204_v23, 64 }
  0xf2   : > { %v766_v54 = vsel %vm750_vm8, %v2211_v48, 64  ;;  %v767_v55 = vsel %vm751_vm9, %v2211_v48, 64  ;;  %v768_v57 = vsel %vm752_vm10, %v2214_v25, 64  ;;  %v769_v58 = vsel %vm753_vm11, %v2214_v25, 64 }
  0xf3   : > { %v770_v59 = vsel %vm754_vm12, %v2217_v49, 64  ;;  %v771_v62 = vsel %vm755_vm13, %v2217_v49, 64  ;;  %v772_v63 = vsel %vm756_vm14, %v2220_v26, 64  ;;  %v773_v0 = vsel %vm757_vm15, %v2220_v26, 64 }
  0xf4   : > { %vm774_vm0 = vcmp.lt.s32.totalorder %v758_v30, %v762_v50  ;;  %vm776_vm1 = vcmp.lt.s32.totalorder %v760_v40, %v764_v52  ;;  %vm797_vm2 = vcmp.lt.s32.totalorder %v759_v39, %v763_v51  ;;  %vm799_vm3 = vcmp.lt.s32.totalorder %v761_v37, %v765_v53 }
  0xf5   : > { %v775_v1 = vsel %vm774_vm0, %v758_v30, %v762_v50  ;;  %v777_v2 = vsel %vm776_vm1, %v760_v40, %v764_v52  ;;  %v798_v3 = vsel %vm797_vm2, %v759_v39, %v763_v51  ;;  %v800_v60 = vsel %vm799_vm3, %v761_v37, %v765_v53 }
  0xf6   : > { %vm778_vm4 = vcmp.lt.s32.totalorder %v775_v1, %v766_v54  ;;  %vm780_vm5 = vcmp.lt.s32.totalorder %v777_v2, %v768_v57  ;;  %vm801_vm6 = vcmp.lt.s32.totalorder %v798_v3, %v767_v55  ;;  %vm803_vm7 = vcmp.lt.s32.totalorder %v800_v60, %v769_v58 }
  0xf7   : > { %v779_v61 = vsel %vm778_vm4, %v775_v1, %v766_v54  ;;  %v781_v4 = vsel %vm780_vm5, %v777_v2, %v768_v57  ;;  %v802_v6 = vsel %vm801_vm6, %v798_v3, %v767_v55  ;;  %v804_v9 = vsel %vm803_vm7, %v800_v60, %v769_v58 }
  0xf8   : > { %vm782_vm8 = vcmp.lt.s32.totalorder %v779_v61, %v770_v59  ;;  %vm784_vm9 = vcmp.lt.s32.totalorder %v781_v4, %v772_v63  ;;  %vm805_vm10 = vcmp.lt.s32.totalorder %v802_v6, %v771_v62  ;;  %vm807_vm11 = vcmp.lt.s32.totalorder %v804_v9, %v773_v0 }
  0xf9   : > { %v783_v12 = vsel %vm782_vm8, %v779_v61, %v770_v59  ;;  %v785_v13 = vsel %vm784_vm9, %v781_v4, %v772_v63  ;;  %v806_v15 = vsel %vm805_vm10, %v802_v6, %v771_v62  ;;  %v808_v19 = vsel %vm807_vm11, %v804_v9, %v773_v0 }
  0xfa   : > { %vm786_vm12 = vcmp.lt.s32.totalorder %v783_v12, %v785_v13  ;;  %vm809_vm13 = vcmp.lt.s32.totalorder %v806_v15, %v808_v19  ;;  %v837_v36 = vmax.f32 %v2208_v47, 1e-10  ;;  %v836_v45 = vmax.f32 %v2206_v33, 1e-10 }
  0xfb   : > { %v787_v29 = vsel %vm786_vm12, %v783_v12, %v785_v13  ;;  %v810_v31 = vsel %vm809_vm13, %v806_v15, %v808_v19 }
  0xfc   : > { %v788_v32 = vrot.slane %v787_v29, 4  ;;  %v811_v27 = vrot.slane %v810_v31, 4  ;;  %1838 = vrcp.f32 %v837_v36  ;;  %v1298_v36 = vld [vmem:[%s403_s16] sm:$0xff] }
  0xfd   : > { %1840 = vrcp.f32 %v836_v45 }
  0xfe   : > { %vm789_vm14 = vcmp.lt.s32.totalorder %v787_v29, %v788_v32  ;;  %vm812_vm15 = vcmp.lt.s32.totalorder %v810_v31, %v811_v27 }
  0xff   : > { %v790_v43 = vsel %vm789_vm14, %v787_v29, %v788_v32  ;;  %v813_v21 = vsel %vm812_vm15, %v810_v31, %v811_v27 }
 0x100   : > { %v791_v22 = vrot.slane %v790_v43, 2  ;;  %v814_v16 = vrot.slane %v813_v21, 2 }
 0x102   : > { %vm792_vm0 = vcmp.lt.s32.totalorder %v790_v43, %v791_v22  ;;  %vm815_vm1 = vcmp.lt.s32.totalorder %v813_v21, %v814_v16 }
 0x103   : > { %v793_v30 = vsel %vm792_vm0, %v790_v43, %v791_v22  ;;  %v816_v39 = vsel %vm815_vm1, %v813_v21, %v814_v16 }
 0x104   : > { %v794_v40 = vrot.slane %v793_v30, 1  ;;  %v817_v37 = vrot.slane %v816_v39, 1 }
 0x106   : > { %vm795_vm2 = vcmp.lt.s32.totalorder %v793_v30, %v794_v40  ;;  %vm818_vm3 = vcmp.lt.s32.totalorder %v816_v39, %v817_v37  ;;  %v2332_v33 = vpop.eup %1838 }
 0x107   : > { %v2320_v47 = vsel %vm795_vm2, %v793_v30, %v794_v40  ;;  %v2322_v50 = vsel %vm818_vm3, %v816_v39, %v817_v37  ;;  %v2406_v58 = vpop.eup %1840  ;;  %v1937_v30 = vmov 0.0   ;;  %v1304_v39 = vcombine.high %v1298_v36, %v1298_v36 }
 0x108   : > { %vm832_vm4 = vcmp.eq.s32.totalorder %v2217_v49, %v2320_v47  ;;  %vm833_vm5 = vcmp.eq.s32.totalorder %v2217_v49, %v2322_v50  ;;  %vm821_vm6 = vcmp.eq.s32.totalorder %v2060_v20, %v2322_v50  ;;  %vm823_vm7 = vcmp.eq.s32.totalorder %v2198_v41, %v2322_v50  ;;  %1265 = vmatprep.mubr.f32.mxu0 %v1937_v30 }
 0x109   : > { %v2338_v51 = vsel %vm832_vm4, 1e+30, %v2189_v7  ;;  %v2344_v52 = vsel %vm833_vm5, 1e+30, %v2191_v8  ;;  %vm825_vm8 = vcmp.eq.s32.totalorder %v2201_v42, %v2322_v50  ;;  %vm827_vm9 = vcmp.eq.s32.totalorder %v2204_v23, %v2322_v50  ;;  %1387 = vmatprep.mubr.f32.mxu1 %v1937_v30 }
 0x10a   : > { %vm829_vm10 = vcmp.eq.s32.totalorder %v2211_v48, %v2322_v50  ;;  %vm831_vm11 = vcmp.eq.s32.totalorder %v2214_v25, %v2322_v50  ;;  %vm835_vm12 = vcmp.eq.s32.totalorder %v2220_v26, %v2322_v50  ;;  %v2357_v7 = vsel %vm821_vm6, %v2332_v33, 0.0  ;;  %v1299_v50 = vld [vmem:[%s2999_s4] sm:$0xff] }
 0x10b   : > { %v2360_v8 = vsel %vm823_vm7, %v2332_v33, 0.0  ;;  %v2363_v53 = vsel %vm821_vm6, 1e+30, %v2143_v18  ;;  %v2366_v54 = vsel %vm823_vm7, 1e+30, %v2139_v11  ;;  %vm820_vm13 = vcmp.eq.s32.totalorder %v2060_v20, %v2320_v47 }
 0x10c   : > { %v2374_v55 = vsel %vm825_vm8, 1e+30, %v2159_v14  ;;  %v2380_v57 = vsel %vm827_vm9, 1e+30, %v2149_v28  ;;  %v2386_v11 = vsel %vm829_vm10, 1e+30, %v2165_v34  ;;  %vm822_vm14 = vcmp.eq.s32.totalorder %v2198_v41, %v2320_v47 }
 0x10d   : > { %v2394_v18 = vsel %vm831_vm11, 1e+30, %v2177_v56  ;;  %v2400_v28 = vsel %vm835_vm12, 1e+30, %v2187_v5  ;;  %v889_v14 = vmin.f32 %v2363_v53, %v2374_v55  ;;  %v890_v34 = vmin.f32 %v2366_v54, %v2380_v57 }
 0x10e   : > { %vm824_vm15 = vcmp.eq.s32.totalorder %v2201_v42, %v2320_v47  ;;  %vm826_vm0 = vcmp.eq.s32.totalorder %v2204_v23, %v2320_v47  ;;  %vm828_vm1 = vcmp.eq.s32.totalorder %v2211_v48, %v2320_v47  ;;  %vm830_vm2 = vcmp.eq.s32.totalorder %v2214_v25, %v2320_v47 }
 0x10f   : > { %v891_v56 = vmin.f32 %v889_v14, %v2386_v11  ;;  %v892_v5 = vmin.f32 %v890_v34, %v2394_v18  ;;  %vm834_vm3 = vcmp.eq.s32.totalorder %v2220_v26, %v2320_v47  ;;  %v2424_v59 = vsel %vm820_vm13, %v2406_v58, 0.0  ;;  %v1420_v47 = vld [vmem:[%s3000_s5] sm:$0xff] }
 0x110   : > { %v2430_v62 = vsel %vm822_vm14, %v2406_v58, 0.0  ;;  %v2436_v63 = vsel %vm820_vm13, 1e+30, %v2141_v17  ;;  %v2442_v0 = vsel %vm822_vm14, 1e+30, %v2137_v10  ;;  %v2448_v1 = vsel %vm825_vm8, %v2332_v33, 0.0  ;;  %1426 = vperm.xlu1 %1835, %v1420_v47  }
 0x111   : > { %v893_v2 = vmin.f32 %v891_v56, %v2344_v52  ;;  %v894_v3 = vmin.f32 %v892_v5, %v2400_v28  ;;  %v2456_v17 = vsel %vm824_vm15, 1e+30, %v2157_v44  ;;  %v2462_v10 = vsel %vm826_vm0, 1e+30, %v2147_v24 }
 0x112   : > { %v2468_v60 = vsel %vm828_vm1, 1e+30, %v2163_v46  ;;  %v2474_v61 = vsel %vm830_vm2, 1e+30, %v2175_v35  ;;  %v2480_v44 = vsel %vm834_vm3, 1e+30, %v2185_v38  ;;  %v876_v24 = vmin.f32 %v2436_v63, %v2456_v17 }
 0x113   : > { %v895_v46 = vmin.f32 %v893_v2, %v894_v3  ;;  %v877_v4 = vmin.f32 %v2442_v0, %v2462_v10  ;;  %v2495_v35 = vsel %vm827_vm9, %v2332_v33, 0.0  ;;  %v2501_v38 = vsel %vm824_vm15, %v2406_v58, 0.0  ;;  %v1300_v2 = vld [vmem:[%s2999_s4 + $0x8] sm:$0xff] }
 0x114   : > { %v878_v6 = vmin.f32 %v876_v24, %v2468_v60  ;;  %v2508_v9 = vsel %vm826_vm0, %v2406_v58, 0.0  ;;  %v2514_v12 = vsel %vm829_vm10, %v2332_v33, 0.0  ;;  %v2520_v13 = vsel %vm831_vm11, %v2332_v33, 0.0  ;;  %v1421_v3 = vld [vmem:[%s3000_s5 + $0x8] sm:$0xff] }
 0x115   : > { %v896_v15 = vrot.slane %v895_v46, 4  ;;  %v879_v19 = vmin.f32 %v877_v4, %v2474_v61  ;;  %v2527_v29 = vsel %vm828_vm1, %v2406_v58, 0.0  ;;  %v2533_v31 = vsel %vm830_vm2, %v2406_v58, 0.0  ;;  %1431 = vperm.xlu0 %1836, %v1421_v3  }
 0x116   : > { %v880_v32 = vmin.f32 %v878_v6, %v2338_v51  ;;  %v2540_v27 = vsel %vm833_vm5, %v2332_v33, 0.0  ;;  %v2546_v43 = vsel %vm835_vm12, %v2332_v33, 0.0  ;;  %v2552_v21 = vsel %vm832_vm4, %v2406_v58, 0.0  ;;  %v1462_v6 = vld [vmem:[%s3002_s7] sm:$0xff] }
 0x117   : > { %v897_v22 = vmin.f32 %v895_v46, %v896_v15  ;;  %v881_v16 = vmin.f32 %v879_v19, %v2480_v44  ;;  %v2559_v45 = vsel %vm834_vm3, %v2406_v58, 0.0  ;;  %vm1318_vm5 = vcmask 1043456   ;;  %v1422_v46 = vld [vmem:[%s3000_s5 + $0x10] sm:$0xff] }
 0x118   : > { %vm1305_vm4 = vcmask 31744   ;;  %1721 = vmatprep.subr.msk.mxu1 %vm1318_vm5, %v1304_v39  ;;  %v1301_v15 = vld [vmem:[%s2999_s4 + $0x10] sm:$0xff]  ;;  %1436 = vperm.xlu1 %1835, %v1422_v46  }
 0x119   : > { %v898_v40 = vrot.slane %v897_v22, 2  ;;  %v882_v37 = vmin.f32 %v880_v32, %v881_v16  ;;  %1722 = vmatpush1.msk.msra.mxu1 %vm1318_vm5, %v1298_v36  ;;  %v1423_v16 = vld [vmem:[%s3000_s5 + $0x18] sm:$0xff]  ;;  %1466 = vperm.xlu0 %1836, %v1462_v6  }
 0x11a   : > { %1723 = vmatmul.mubr.msk.f32.vlgmr.msra.gmra.mrb[0].mxu1 %vm1305_vm4, %v1299_v50 }
 0x11b   : > { %v899_v14 = vmin.f32 %v897_v22, %v898_v40  ;;  %v883_v34 = vrot.slane %v882_v37, 4  ;;  %1393 = vmatprep.mubr.f32.mxu1 %v1937_v30 }
 0x11c   : > { %1441 = vperm.xlu1 %1835, %v1423_v16  }
 0x11d   : > { %v900_v56 = vrot.slane %v899_v14, 1  ;;  %v884_v5 = vmin.f32 %v882_v37, %v883_v34  ;;  %v1302_v37 = vld [vmem:[%s2999_s4 + $0x18] sm:$0xff] }
 0x11e   : > { %1724 = vmatmul.mubr.msk.f32.gmra.mrb[2].mxu1 %vm1305_vm4, %v1300_v2 }
 0x11f   : > { %v901_v24 = vmin.f32 %v899_v14, %v900_v56  ;;  %v885_v4 = vrot.slane %v884_v5, 2  ;;  %1399 = vmatprep.mubr.f32.mxu1 %v1937_v30 }
 0x121   : > { %vm903_vm6 = vcmp.eq.f32.partialorder %v2363_v53, %v901_v24  ;;  %vm905_vm7 = vcmp.eq.f32.partialorder %v2366_v54, %v901_v24  ;;  %vm907_vm8 = vcmp.eq.f32.partialorder %v2374_v55, %v901_v24  ;;  %vm909_vm9 = vcmp.eq.f32.partialorder %v2380_v57, %v901_v24 }
 0x122   : > { %vm911_vm10 = vcmp.eq.f32.partialorder %v2386_v11, %v901_v24  ;;  %vm913_vm11 = vcmp.eq.f32.partialorder %v2394_v18, %v901_v24  ;;  %v919_v19 = vsel %vm903_vm6, %v2060_v20, 64  ;;  %v921_v36 = vsel %vm905_vm7, %v2198_v41, 64  ;;  %1725 = vmatmul.mubr.msk.f32.gmra.mrb[4].mxu1 %vm1305_vm4, %v1301_v15 }
 0x123   : > { %v923_v32 = vsel %vm907_vm8, %v2201_v42, 64  ;;  %v925_v22 = vsel %vm909_vm9, %v2204_v23, 64  ;;  %vm915_vm12 = vcmp.eq.f32.partialorder %v2344_v52, %v901_v24  ;;  %vm917_vm13 = vcmp.eq.f32.partialorder %v2400_v28, %v901_v24  ;;  %1405 = vmatprep.mubr.f32.mxu1 %v1937_v30 }
 0x124   : > { %vm957_vm14 = vcmp.lt.s32.totalorder %v919_v19, %v923_v32  ;;  %vm959_vm15 = vcmp.lt.s32.totalorder %v921_v36, %v925_v22  ;;  %v997_v39 = vmax.f32 %v901_v24, 1e-10  ;;  %v886_v40 = vmin.f32 %v884_v5, %v885_v4  ;;  %v1463_v5 = vld [vmem:[%s3002_s7 + $0x8] sm:$0xff] }
 0x125   : > { %v927_v50 = vsel %vm911_vm10, %v2211_v48, 64  ;;  %v929_v14 = vsel %vm913_vm11, %v2214_v25, 64  ;;  %v958_v34 = vsel %vm957_vm14, %v919_v19, %v923_v32  ;;  %v960_v47 = vsel %vm959_vm15, %v921_v36, %v925_v22  ;;  %1471 = vperm.xlu1 %1835, %v1463_v5  }
 0x126   : > { %vm961_vm0 = vcmp.lt.s32.totalorder %v958_v34, %v927_v50  ;;  %vm963_vm1 = vcmp.lt.s32.totalorder %v960_v47, %v929_v14  ;;  %1842 = vrcp.f32 %v997_v39  ;;  %v887_v56 = vrot.slane %v886_v40, 1  ;;  %1726 = vmatmul.mubr.msk.f32.gmra.mrb[6].mxu1 %vm1305_vm4, %v1302_v37 }
 0x127   : > { %v931_v2 = vsel %vm915_vm12, %v2217_v49, 64  ;;  %v933_v3 = vsel %vm917_vm13, %v2220_v26, 64  ;;  %v962_v46 = vsel %vm961_vm0, %v958_v34, %v927_v50  ;;  %v964_v4 = vsel %vm963_vm1, %v960_v47, %v929_v14  ;;  %1545 = vmatprep.mubr.f32.mxu1 %v1937_v30 }
 0x128   : > { %vm965_vm2 = vcmp.lt.s32.totalorder %v962_v46, %v931_v2  ;;  %vm967_vm3 = vcmp.lt.s32.totalorder %v964_v4, %v933_v3  ;;  %v888_v6 = vmin.f32 %v886_v40, %v887_v56 }
 0x129   : > { %v966_v15 = vsel %vm965_vm2, %v962_v46, %v931_v2  ;;  %v968_v19 = vsel %vm967_vm3, %v964_v4, %v933_v3 }
 0x12a   : > { %vm969_vm5 = vcmp.lt.s32.totalorder %v966_v15, %v968_v19  ;;  %vm902_vm6 = vcmp.eq.f32.partialorder %v2436_v63, %v888_v6  ;;  %vm904_vm7 = vcmp.eq.f32.partialorder %v2442_v0, %v888_v6  ;;  %vm906_vm8 = vcmp.eq.f32.partialorder %v2456_v17, %v888_v6 }
 0x12b   : > { %v970_v24 = vsel %vm969_vm5, %v966_v15, %v968_v19  ;;  %vm908_vm9 = vcmp.eq.f32.partialorder %v2462_v10, %v888_v6  ;;  %vm910_vm4 = vcmp.eq.f32.partialorder %v2468_v60, %v888_v6  ;;  %vm912_vm10 = vcmp.eq.f32.partialorder %v2474_v61, %v888_v6 }
 0x12c   : > { %v971_v36 = vrot.slane %v970_v24, 4  ;;  %v918_v32 = vsel %vm902_vm6, %v2060_v20, 64  ;;  %vm914_vm11 = vcmp.eq.f32.partialorder %v2338_v51, %v888_v6  ;;  %v920_v22 = vsel %vm904_vm7, %v2198_v41, 64 }
 0x12d   : > { %v922_v16 = vsel %vm906_vm8, %v2201_v42, 64  ;;  %v924_v39 = vsel %vm908_vm9, %v2204_v23, 64  ;;  %vm916_vm13 = vcmp.eq.f32.partialorder %v2480_v44, %v888_v6  ;;  %v926_v40 = vsel %vm910_vm4, %v2211_v48, 64 }
 0x12e   : > { %vm972_vm12 = vcmp.lt.s32.totalorder %v970_v24, %v971_v36  ;;  %v928_v37 = vsel %vm912_vm10, %v2214_v25, 64  ;;  %vm934_vm14 = vcmp.lt.s32.totalorder %v918_v32, %v922_v16  ;;  %vm936_vm15 = vcmp.lt.s32.totalorder %v920_v22, %v924_v39 }
 0x12f   : > { %v973_v50 = vsel %vm972_vm12, %v970_v24, %v971_v36  ;;  %v996_v14 = vmax.f32 %v888_v6, 1e-10  ;;  %v930_v56 = vsel %vm914_vm11, %v2217_v49, 64  ;;  %v935_v5 = vsel %vm934_vm14, %v918_v32, %v922_v16 }
 0x130   : > { %v2639_v34 = vpop.eup %1842  ;;  %v974_v47 = vrot.slane %v973_v50, 2  ;;  %v937_v2 = vsel %vm936_vm15, %v920_v22, %v924_v39  ;;  %v932_v3 = vsel %vm916_vm13, %v2220_v26, 64  ;;  %vm938_vm0 = vcmp.lt.s32.totalorder %v935_v5, %v926_v40 }
 0x131   : > { %vm940_vm1 = vcmp.lt.s32.totalorder %v937_v2, %v928_v37  ;;  %v2645_v46 = vadd.f32 %v2639_v34, %v2332_v33  ;;  %v939_v4 = vsel %vm938_vm0, %v935_v5, %v926_v40  ;;  %1844 = vrcp.f32 %v996_v14 }
 0x132   : > { %vm975_vm2 = vcmp.lt.s32.totalorder %v973_v50, %v974_v47  ;;  %v941_v15 = vsel %vm940_vm1, %v937_v2, %v928_v37  ;;  %vm942_vm3 = vcmp.lt.s32.totalorder %v939_v4, %v930_v56 }
 0x133   : > { %v976_v6 = vsel %vm975_vm2, %v973_v50, %v974_v47  ;;  %vm944_vm5 = vcmp.lt.s32.totalorder %v941_v15, %v932_v3  ;;  %v943_v24 = vsel %vm942_vm3, %v939_v4, %v930_v56 }
 0x134   : > { %v977_v19 = vrot.slane %v976_v6, 1  ;;  %v945_v36 = vsel %vm944_vm5, %v941_v15, %v932_v3 }
 0x135   : > { %vm946_vm6 = vcmp.lt.s32.totalorder %v943_v24, %v945_v36 }
 0x136   : > { %vm978_vm7 = vcmp.lt.s32.totalorder %v976_v6, %v977_v19  ;;  %v947_v32 = vsel %vm946_vm6, %v943_v24, %v945_v36 }
 0x137   : > { %v2647_v22 = vsel %vm978_vm7, %v976_v6, %v977_v19  ;;  %v948_v16 = vrot.slane %v947_v32, 4 }
 0x138   : > { %vm981_vm8 = vcmp.eq.s32.totalorder %v2060_v20, %v2647_v22  ;;  %vm983_vm9 = vcmp.eq.s32.totalorder %v2198_v41, %v2647_v22  ;;  %vm985_vm4 = vcmp.eq.s32.totalorder %v2201_v42, %v2647_v22  ;;  %vm987_vm10 = vcmp.eq.s32.totalorder %v2204_v23, %v2647_v22 }
 0x139   : > { %vm989_vm11 = vcmp.eq.s32.totalorder %v2211_v48, %v2647_v22  ;;  %vm991_vm12 = vcmp.eq.s32.totalorder %v2214_v25, %v2647_v22  ;;  %vm993_vm13 = vcmp.eq.s32.totalorder %v2217_v49, %v2647_v22  ;;  %v2667_v33 = vsel %vm981_vm8, 1e+30, %v2363_v53 }
 0x13a   : > { %v2673_v39 = vsel %vm983_vm9, 1e+30, %v2366_v54  ;;  %v2679_v40 = vsel %vm985_vm4, 1e+30, %v2374_v55  ;;  %v2685_v37 = vsel %vm987_vm10, 1e+30, %v2380_v57  ;;  %vm949_vm14 = vcmp.lt.s32.totalorder %v947_v32, %v948_v16 }
 0x13b   : > { %v1845_v53 = vpop.eup %1844  ;;  %vm995_vm15 = vcmp.eq.s32.totalorder %v2220_v26, %v2647_v22  ;;  %v2693_v54 = vsel %vm989_vm11, 1e+30, %v2386_v11  ;;  %v1049_v55 = vmin.f32 %v2667_v33, %v2679_v40  ;;  %v2701_v57 = vsel %vm991_vm12, 1e+30, %v2394_v18 }
 0x13c   : > { %v2707_v50 = vsel %vm993_vm13, 1e+30, %v2344_v52  ;;  %v1050_v14 = vmin.f32 %v2673_v39, %v2685_v37  ;;  %v950_v11 = vsel %vm949_vm14, %v947_v32, %v948_v16  ;;  %v2717_v18 = vsel %vm989_vm11, %v2639_v34, %v2514_v12 }
 0x13d   : > { %v1051_v47 = vmin.f32 %v1049_v55, %v2693_v54  ;;  %v951_v56 = vrot.slane %v950_v11, 2  ;;  %v2724_v52 = vsel %vm991_vm12, %v2639_v34, %v2520_v13  ;;  %v2732_v2 = vsel %vm993_vm13, %v2639_v34, %v2540_v27 }
 0x13e   : > { %v1052_v5 = vmin.f32 %v1050_v14, %v2701_v57  ;;  %v2736_v12 = vsel %vm995_vm15, %v2639_v34, %v2546_v43  ;;  %v2739_v3 = vadd.f32 %v1845_v53, %v2406_v58  ;;  %v2742_v4 = vsel %vm995_vm15, 1e+30, %v2400_v28 }
 0x13f   : > { %v1053_v13 = vmin.f32 %v1051_v47, %v2707_v50  ;;  %vm952_vm0 = vcmp.lt.s32.totalorder %v950_v11, %v951_v56 }
 0x140   : > { %v1054_v15 = vmin.f32 %v1052_v5, %v2742_v4  ;;  %v953_v6 = vsel %vm952_vm0, %v950_v11, %v951_v56 }
 0x141   : > { %v954_v19 = vrot.slane %v953_v6, 1 }
 0x142   : > { %v1055_v24 = vmin.f32 %v1053_v13, %v1054_v15 }
 0x143   : > { %vm955_vm1 = vcmp.lt.s32.totalorder %v953_v6, %v954_v19 }
 0x144   : > { %v1056_v27 = vrot.slane %v1055_v24, 4  ;;  %v956_v36 = vsel %vm955_vm1, %v953_v6, %v954_v19 }
 0x145   : > { %vm980_vm2 = vcmp.eq.s32.totalorder %v2060_v20, %v956_v36  ;;  %vm982_vm3 = vcmp.eq.s32.totalorder %v2198_v41, %v956_v36  ;;  %vm984_vm5 = vcmp.eq.s32.totalorder %v2201_v42, %v956_v36  ;;  %vm986_vm6 = vcmp.eq.s32.totalorder %v2204_v23, %v956_v36 }
 0x146   : > { %v1057_v58 = vmin.f32 %v1055_v24, %v1056_v27  ;;  %vm988_vm7 = vcmp.eq.s32.totalorder %v2211_v48, %v956_v36  ;;  %vm990_vm11 = vcmp.eq.s32.totalorder %v2214_v25, %v956_v36  ;;  %v2753_v28 = vsel %vm980_vm2, %v1845_v53, %v2424_v59 }
 0x147   : > { %v2756_v43 = vsel %vm982_vm3, %v1845_v53, %v2430_v62  ;;  %v2759_v32 = vsel %vm980_vm2, 1e+30, %v2436_v63  ;;  %v2762_v55 = vsel %vm982_vm3, 1e+30, %v2442_v0  ;;  %v2765_v14 = vsel %vm984_vm5, 1e+30, %v2456_v17 }
 0x148   : > { %v1058_v16 = vrot.slane %v1057_v58, 2  ;;  %v2768_v11 = vsel %vm984_vm5, %v1845_v53, %v2501_v38  ;;  %vm992_vm12 = vcmp.eq.s32.totalorder %v2217_v49, %v956_v36  ;;  %vm994_vm13 = vcmp.eq.s32.totalorder %v2220_v26, %v956_v36 }
 0x149   : > { %v2775_v59 = vsel %vm986_vm6, 1e+30, %v2462_v10  ;;  %v1036_v62 = vmin.f32 %v2759_v32, %v2765_v14  ;;  %v2782_v0 = vsel %vm988_vm7, 1e+30, %v2468_v60  ;;  %v2787_v17 = vsel %vm990_vm11, 1e+30, %v2474_v61 }
 0x14a   : > { %v1059_v63 = vmin.f32 %v1057_v58, %v1058_v16  ;;  %v1037_v38 = vmin.f32 %v2762_v55, %v2775_v59  ;;  %v2795_v47 = vsel %vm986_vm6, %v1845_v53, %v2508_v9  ;;  %v2800_v60 = vsel %vm988_vm7, %v1845_v53, %v2527_v29 }
 0x14b   : > { %v1038_v10 = vmin.f32 %v1036_v62, %v2782_v0  ;;  %v2805_v61 = vsel %vm990_vm11, %v1845_v53, %v2533_v31  ;;  %v2811_v13 = vsel %vm992_vm12, %v1845_v53, %v2552_v21  ;;  %v2816_v9 = vsel %vm994_vm13, %v1845_v53, %v2559_v45 }
 0x14c   : > { %v1060_v56 = vrot.slane %v1059_v63, 1  ;;  %v1039_v5 = vmin.f32 %v1037_v38, %v2787_v17  ;;  %v2821_v15 = vsel %vm992_vm12, 1e+30, %v2338_v51  ;;  %v2826_v31 = vsel %vm994_vm13, 1e+30, %v2480_v44 }
 0x14d   : > { %v1040_v6 = vmin.f32 %v1038_v10, %v2821_v15 }
 0x14e   : > { %v1061_v29 = vmin.f32 %v1059_v63, %v1060_v56  ;;  %v1041_v21 = vmin.f32 %v1039_v5, %v2826_v31 }
 0x150   : > { %vm1063_vm14 = vcmp.eq.f32.partialorder %v2667_v33, %v1061_v29  ;;  %vm1065_vm15 = vcmp.eq.f32.partialorder %v2673_v39, %v1061_v29  ;;  %vm1067_vm0 = vcmp.eq.f32.partialorder %v2679_v40, %v1061_v29  ;;  %vm1069_vm1 = vcmp.eq.f32.partialorder %v2685_v37, %v1061_v29 }
 0x151   : > { %vm1071_vm2 = vcmp.eq.f32.partialorder %v2693_v54, %v1061_v29  ;;  %vm1073_vm3 = vcmp.eq.f32.partialorder %v2701_v57, %v1061_v29  ;;  %v1079_v51 = vsel %vm1063_vm14, %v2060_v20, 64  ;;  %v1081_v44 = vsel %vm1065_vm15, %v2198_v41, 64 }
 0x152   : > { %v1083_v45 = vsel %vm1067_vm0, %v2201_v42, 64  ;;  %v1085_v53 = vsel %vm1069_vm1, %v2204_v23, 64  ;;  %vm1075_vm5 = vcmp.eq.f32.partialorder %v2707_v50, %v1061_v29  ;;  %vm1077_vm6 = vcmp.eq.f32.partialorder %v2742_v4, %v1061_v29 }
 0x153   : > { %vm1117_vm7 = vcmp.lt.s32.totalorder %v1079_v51, %v1083_v45  ;;  %vm1119_vm11 = vcmp.lt.s32.totalorder %v1081_v44, %v1085_v53  ;;  %v1157_v33 = vmax.f32 %v1061_v29, 1e-10  ;;  %v1042_v39 = vmin.f32 %v1040_v6, %v1041_v21 }
 0x154   : > { %v1087_v40 = vsel %vm1071_vm2, %v2211_v48, 64  ;;  %v1089_v37 = vsel %vm1073_vm3, %v2214_v25, 64  ;;  %v1118_v54 = vsel %vm1117_vm7, %v1079_v51, %v1083_v45  ;;  %v1120_v57 = vsel %vm1119_vm11, %v1081_v44, %v1085_v53 }
 0x155   : > { %vm1121_vm12 = vcmp.lt.s32.totalorder %v1118_v54, %v1087_v40  ;;  %vm1123_vm13 = vcmp.lt.s32.totalorder %v1120_v57, %v1089_v37  ;;  %1846 = vrcp.f32 %v1157_v33  ;;  %v1043_v19 = vrot.slane %v1042_v39, 4 }
 0x156   : > { %v1091_v24 = vsel %vm1075_vm5, %v2217_v49, 64  ;;  %v1093_v50 = vsel %vm1077_vm6, %v2220_v26, 64  ;;  %v1122_v27 = vsel %vm1121_vm12, %v1118_v54, %v1087_v40  ;;  %v1124_v4 = vsel %vm1123_vm13, %v1120_v57, %v1089_v37 }
 0x157   : > { %vm1125_vm14 = vcmp.lt.s32.totalorder %v1122_v27, %v1091_v24  ;;  %vm1127_vm15 = vcmp.lt.s32.totalorder %v1124_v4, %v1093_v50  ;;  %v1044_v36 = vmin.f32 %v1042_v39, %v1043_v19  ;;  %v1003_v6 = vsel %vm981_vm8, %v2639_v34, %v2357_v7 }
 0x158   : > { %v1126_v58 = vsel %vm1125_vm14, %v1122_v27, %v1091_v24  ;;  %v1128_v16 = vsel %vm1127_vm15, %v1124_v4, %v1093_v50  ;;  %v1005_v44 = vsel %vm983_vm9, %v2639_v34, %v2360_v8  ;;  %v1007_v45 = vsel %vm985_vm4, %v2639_v34, %v2448_v1 }
 0x159   : > { %vm1129_vm0 = vcmp.lt.s32.totalorder %v1126_v58, %v1128_v16  ;;  %v1045_v62 = vrot.slane %v1044_v36, 2  ;;  %v1009_v7 = vsel %vm987_vm10, %v2639_v34, %v2495_v35 }
 0x15a   : > { %v1130_v63 = vsel %vm1129_vm0, %v1126_v58, %v1128_v16 }
 0x15b   : > { %v1131_v38 = vrot.slane %v1130_v63, 4  ;;  %v1046_v10 = vmin.f32 %v1044_v36, %v1045_v62 }
 0x15d   : > { %vm1132_vm1 = vcmp.lt.s32.totalorder %v1130_v63, %v1131_v38  ;;  %v1047_v56 = vrot.slane %v1046_v10, 1 }
 0x15e   : > { %v1133_v5 = vsel %vm1132_vm1, %v1130_v63, %v1131_v38 }
 0x15f   : > { %v2846_v29 = vpop.eup %1846  ;;  %v1134_v21 = vrot.slane %v1133_v5, 2  ;;  %v1048_v51 = vmin.f32 %v1046_v10, %v1047_v56 }
 0x160   : > { %v2870_v53 = vadd.f32 %v2846_v29, %v2645_v46 }
 0x161   : > { %vm1135_vm8 = vcmp.lt.s32.totalorder %v1133_v5, %v1134_v21  ;;  %vm1062_vm2 = vcmp.eq.f32.partialorder %v2759_v32, %v1048_v51  ;;  %vm1064_vm9 = vcmp.eq.f32.partialorder %v2762_v55, %v1048_v51  ;;  %vm1066_vm3 = vcmp.eq.f32.partialorder %v2765_v14, %v1048_v51 }
 0x162   : > { %v1136_v8 = vsel %vm1135_vm8, %v1133_v5, %v1134_v21  ;;  %vm1068_vm4 = vcmp.eq.f32.partialorder %v2775_v59, %v1048_v51  ;;  %vm1070_vm5 = vcmp.eq.f32.partialorder %v2782_v0, %v1048_v51  ;;  %vm1072_vm6 = vcmp.eq.f32.partialorder %v2787_v17, %v1048_v51 }
 0x163   : > { %v1137_v1 = vrot.slane %v1136_v8, 1  ;;  %vm1074_vm10 = vcmp.eq.f32.partialorder %v2821_v15, %v1048_v51  ;;  %vm1076_vm7 = vcmp.eq.f32.partialorder %v2826_v31, %v1048_v51  ;;  %v1078_v35 = vsel %vm1062_vm2, %v2060_v20, 64 }
 0x164   : > { %v1080_v34 = vsel %vm1064_vm9, %v2198_v41, 64  ;;  %v1082_v46 = vsel %vm1066_vm3, %v2201_v42, 64  ;;  %v1084_v22 = vsel %vm1068_vm4, %v2204_v23, 64  ;;  %v1086_v32 = vsel %vm1070_vm5, %v2211_v48, 64 }
 0x165   : > { %vm1138_vm11 = vcmp.lt.s32.totalorder %v1136_v8, %v1137_v1  ;;  %v1088_v55 = vsel %vm1072_vm6, %v2214_v25, 64  ;;  %v1090_v14 = vsel %vm1074_vm10, %v2217_v49, 64  ;;  %v1092_v59 = vsel %vm1076_vm7, %v2220_v26, 64 }
 0x166   : > { %v1139_v0 = vsel %vm1138_vm11, %v1136_v8, %v1137_v1  ;;  %vm1094_vm12 = vcmp.lt.s32.totalorder %v1078_v35, %v1082_v46  ;;  %vm1096_vm13 = vcmp.lt.s32.totalorder %v1080_v34, %v1084_v22  ;;  %v1156_v17 = vmax.f32 %v1048_v51, 1e-10 }
 0x167   : > { %vm1141_vm14 = vcmp.eq.s32.totalorder %v2060_v20, %v1139_v0  ;;  %vm1143_vm15 = vcmp.eq.s32.totalorder %v2198_v41, %v1139_v0  ;;  %v1095_v15 = vsel %vm1094_vm12, %v1078_v35, %v1082_v46  ;;  %v1097_v31 = vsel %vm1096_vm13, %v1080_v34, %v1084_v22 }
 0x168   : > { %v1163_v33 = vsel %vm1141_vm14, %v2846_v29, %v1003_v6  ;;  %v1165_v39 = vsel %vm1143_vm15, %v2846_v29, %v1005_v44  ;;  %vm1098_vm0 = vcmp.lt.s32.totalorder %v1095_v15, %v1086_v32  ;;  %vm1100_vm1 = vcmp.lt.s32.totalorder %v1097_v31, %v1088_v55 }
 0x169   : > { %v1739_v40 = vpack.c.bf16 %v1165_v39, %v1163_v33  ;;  %v1099_v37 = vsel %vm1098_vm0, %v1095_v15, %v1086_v32  ;;  %v1101_v54 = vsel %vm1100_vm1, %v1097_v31, %v1088_v55  ;;  %1848 = vrcp.f32 %v1156_v17 }
 0x16a   : > { %vm1102_vm8 = vcmp.lt.s32.totalorder %v1099_v37, %v1090_v14  ;;  %vm1104_vm2 = vcmp.lt.s32.totalorder %v1101_v54, %v1092_v59  ;;  %vm1145_vm9 = vcmp.eq.s32.totalorder %v2201_v42, %v1139_v0  ;;  %vm1147_vm3 = vcmp.eq.s32.totalorder %v2204_v23, %v1139_v0 }
 0x16b   : > { %1740 = vmatprep.subr.bf16.mxu0 %v1739_v40  ;;  %v1103_v57 = vsel %vm1102_vm8, %v1099_v37, %v1090_v14  ;;  %v1105_v19 = vsel %vm1104_vm2, %v1101_v54, %v1092_v59  ;;  %v1167_v24 = vsel %vm1145_vm9, %v2846_v29, %v1007_v45  ;;  %v1169_v50 = vsel %vm1147_vm3, %v2846_v29, %v1009_v7 }
 0x16c   : > { %vm1106_vm4 = vcmp.lt.s32.totalorder %v1103_v57, %v1105_v19  ;;  %v1743_v27 = vpack.c.bf16 %v1169_v50, %v1167_v24  ;;  %vm1149_vm5 = vcmp.eq.s32.totalorder %v2211_v48, %v1139_v0  ;;  %vm1151_vm6 = vcmp.eq.s32.totalorder %v2214_v25, %v1139_v0 }
 0x16d   : > { %v1107_v4 = vsel %vm1106_vm4, %v1103_v57, %v1105_v19  ;;  %v1171_v36 = vsel %vm1149_vm5, %v2846_v29, %v2717_v18  ;;  %v1173_v58 = vsel %vm1151_vm6, %v2846_v29, %v2724_v52  ;;  %vm1153_vm10 = vcmp.eq.s32.totalorder %v2217_v49, %v1139_v0 }
 0x16e   : > { %v1108_v16 = vrot.slane %v1107_v4, 4  ;;  %v1747_v62 = vpack.c.bf16 %v1173_v58, %v1171_v36  ;;  %vm1155_vm7 = vcmp.eq.s32.totalorder %v2220_v26, %v1139_v0  ;;  %v1175_v63 = vsel %vm1153_vm10, %v2846_v29, %v2732_v2 }
 0x16f   : > { %v1177_v38 = vsel %vm1155_vm7, %v2846_v29, %v2736_v12  ;;  %vm1188_vm4 = vcmask 523264   ;;  %vm1474_vm5 = vcmask 261120  }
 0x170   : > { %vm1109_vm11 = vcmp.lt.s32.totalorder %v1107_v4, %v1108_v16  ;;  %v1751_v10 = vpack.c.bf16 %v1177_v38, %v1175_v63 }
 0x171   : > { %v1110_v56 = vsel %vm1109_vm11, %v1107_v4, %v1108_v16 }
 0x172   : > { %v1111_v5 = vrot.slane %v1110_v56, 2 }
 0x173   : > { %v1849_v18 = vpop.eup %1848 }
 0x174   : > { %vm1112_vm12 = vcmp.lt.s32.totalorder %v1110_v56, %v1111_v5  ;;  %v1178_v52 = vadd.f32 %v1849_v18, %v2739_v3 }
 0x175   : > { %v1113_v6 = vsel %vm1112_vm12, %v1110_v56, %v1111_v5 }
 0x176   : > { %v1114_v21 = vrot.slane %v1113_v6, 1  ;;  %1850 = vrcp.f32 %v1178_v52 }
 0x177   : > { %1852 = vrcp.f32 %v2870_v53 }
 0x178   : > { %vm1115_vm13 = vcmp.lt.s32.totalorder %v1113_v6, %v1114_v21 }
 0x179   : > { %v1116_v51 = vsel %vm1115_vm13, %v1113_v6, %v1114_v21 }
 0x17a   : > { %vm1140_vm14 = vcmp.eq.s32.totalorder %v2060_v20, %v1116_v51  ;;  %vm1142_vm15 = vcmp.eq.s32.totalorder %v2198_v41, %v1116_v51  ;;  %vm1144_vm0 = vcmp.eq.s32.totalorder %v2201_v42, %v1116_v51  ;;  %vm1146_vm1 = vcmp.eq.s32.totalorder %v2204_v23, %v1116_v51 }
 0x17b   : > { %v1162_v2 = vsel %vm1140_vm14, %v1849_v18, %v2753_v28  ;;  %v1164_v12 = vsel %vm1142_vm15, %v1849_v18, %v2756_v43  ;;  %v1166_v29 = vsel %vm1144_vm0, %v1849_v18, %v2768_v11  ;;  %v1168_v3 = vsel %vm1146_vm1, %v1849_v18, %v2795_v47 }
 0x17c   : > { %v1741_v44 = vpack.c.bf16 %v1164_v12, %v1162_v2  ;;  %v1745_v45 = vpack.c.bf16 %v1168_v3, %v1166_v29  ;;  %vm1148_vm8 = vcmp.eq.s32.totalorder %v2211_v48, %v1116_v51  ;;  %vm1150_vm2 = vcmp.eq.s32.totalorder %v2214_v25, %v1116_v51  ;;  %v1184_v48 = vld [vmem:[%s409_s21] sm:$0xff]  ;;  %v1185_v25 = vld [vmem:[%s409_s21 + $0x8] sm:$0xff] }
 0x17d   : > { %v1170_v20 = vsel %vm1148_vm8, %v1849_v18, %v2800_v60  ;;  %v1172_v41 = vsel %vm1150_vm2, %v1849_v18, %v2805_v61  ;;  %vm1152_vm9 = vcmp.eq.s32.totalorder %v2217_v49, %v1116_v51  ;;  %vm1154_vm3 = vcmp.eq.s32.totalorder %v2220_v26, %v1116_v51  ;;  %v1186_v49 = vld [vmem:[%s409_s21 + $0x10] sm:$0xff]  ;;  %v1187_v26 = vld [vmem:[%s409_s21 + $0x18] sm:$0xff]  ;;  %s2947_s21 = scalar_lea.hbm %s3003_s8, %s1738_s14 }
 0x17e   : > { %1742 = vmatpush1.bf16.msra.mxu0 %v1741_v44  ;;  %v1749_v42 = vpack.c.bf16 %v1172_v41, %v1170_v20  ;;  %v1174_v23 = vsel %vm1152_vm9, %v1849_v18, %v2811_v13  ;;  %v1176_v28 = vsel %vm1154_vm3, %v1849_v18, %v2816_v9 }
 0x17f   : > { %1744 = vmatprep.subr.bf16.mxu0 %v1743_v27  ;;  %v1753_v43 = vpack.c.bf16 %v1176_v28, %v1174_v23 }
 0x180   : > { %v1851_v1 = vpop.eup %1850 }
 0x181   : > { %v1853_v34 = vpop.eup %1852 }
 0x182   : > { %1746 = vmatpush1.bf16.msra.mxu0 %v1745_v45 }
 0x183   : > { %1748 = vmatprep.subr.bf16.mxu0 %v1747_v62 }
 0x186   : > { %1750 = vmatpush1.bf16.msra.mxu0 %v1749_v42 }
 0x187   : > { %1752 = vmatprep.subr.bf16.mxu0 %v1751_v10 }
 0x18a   : > { %1754 = vmatpush1.bf16.msra.mxu0 %v1753_v43  ;;  %v1460_v43 = vld [vmem:[%s3001_s6] sm:$0xff] }
 0x18d   : > { %1717 = vmatmul.mubr.msk.f32.vlgmr.msra.gmra.mrb[0].mxu0 %vm1188_vm4, %v1184_v48  ;;  %v1461_v48 = vld [vmem:[%s3001_s6 + $0x8] sm:$0xff] }
 0x18e   : > { %1271 = vmatprep.mubr.f32.mxu0 %v1937_v30 }
 0x18f   : > { %v1427_v14 = vpop.permute.xlu1 %1426 }
 0x191   : > { %1718 = vmatmul.mubr.msk.f32.gmra.mrb[2].mxu0 %vm1188_vm4, %v1185_v25 }
 0x192   : > { %1277 = vmatprep.mubr.f32.mxu0 %v1937_v30 }
 0x194   : > { %v1432_v31 = vpop.permute.xlu0 %1431 }
 0x195   : > { %1719 = vmatmul.mubr.msk.f32.gmra.mrb[4].mxu0 %vm1188_vm4, %v1186_v49 }
 0x196   : > { %1283 = vmatprep.mubr.f32.mxu0 %v1937_v30 }
 0x197   : > { %v1437_v50 = vpop.permute.xlu1 %1436 }
 0x198   : > { %v1467_v25 = vpop.permute.xlu0 %1466 }
 0x199   : > { %1720 = vmatmul.mubr.msk.f32.gmra.mrb[6].mxu0 %vm1188_vm4, %v1187_v26 }
 0x19b   : > { %v1442_v2 = vpop.permute.xlu1 %1441 }
 0x1ed   : > { %v1389_v11 = vpop.f32.mrb[0].mxu1 }
 0x1ee   : > { %v1391_v47 = vpop.f32.mrb[1].mxu1 }
 0x1f1   : > { %v1395_v60 = vpop.f32.mrb[2].mxu1 }
 0x1f2   : > { %v1397_v61 = vpop.f32.mrb[3].mxu1 }
 0x1f5   : > { %v1401_v13 = vpop.f32.mrb[4].mxu1 }
 0x1f6   : > { %v1403_v9 = vpop.f32.mrb[5].mxu1 }
 0x1f9   : > { %v1407_v7 = vpop.f32.mrb[6].mxu1 }
 0x1fa   : > { %v1409_v8 = vpop.f32.mrb[7].mxu1 }
 0x260   : > { %v1267_v35 = vpop.f32.mrb[0].mxu0 }
 0x261   : > { %v1290_v46 = vmul.f32 %v1851_v1, %v1267_v35  ;;  %v1269_v22 = vpop.f32.mrb[1].mxu0 }
 0x262   : > { %v1291_v32 = vmul.f32 %v1853_v34, %v1269_v22 }
 0x263   : > { %v1412_v55 = vadd.f32 %v1389_v11, %v1290_v46 }
 0x264   : > { %v1413_v59 = vadd.f32 %v1391_v47, %v1291_v32  ;;  %v1273_v0 = vpop.f32.mrb[2].mxu0 }
 0x265   : > { %v1292_v17 = vmul.f32 %v1851_v1, %v1273_v0  ;;  %v1275_v15 = vpop.f32.mrb[3].mxu0  ;;  %v1444_v39 = vadd.f32 %v1427_v14, %v1412_v55 }
 0x266   : > { %v1293_v33 = vmul.f32 %v1853_v34, %v1275_v15  ;;  %v1445_v37 = vadd.f32 %v1427_v14, %v1413_v59 }
 0x267   : > { %v1414_v40 = vadd.f32 %v1395_v60, %v1292_v17  ;;  %v1452_v36 = vmax.f32 %v1444_v39, 0.0 }
 0x268   : > { %v1415_v54 = vadd.f32 %v1397_v61, %v1293_v33  ;;  %v1279_v57 = vpop.f32.mrb[4].mxu0  ;;  %v1453_v62 = vmax.f32 %v1445_v37, 0.0  ;;  %v1472_v61 = vpop.permute.xlu1 %1471 }
 0x269   : > { %v1446_v53 = vadd.f32 %v1432_v31, %v1414_v40  ;;  %v1294_v19 = vmul.f32 %v1851_v1, %v1279_v57  ;;  %v1281_v24 = vpop.f32.mrb[5].mxu0 }
 0x26a   : > { %v1447_v27 = vadd.f32 %v1432_v31, %v1415_v54  ;;  %v1295_v4 = vmul.f32 %v1853_v34, %v1281_v24 }
 0x26b   : > { %v1454_v58 = vmax.f32 %v1446_v53, 0.0  ;;  %v1416_v16 = vadd.f32 %v1401_v13, %v1294_v19 }
 0x26c   : > { %v1455_v63 = vmax.f32 %v1447_v27, 0.0  ;;  %v1417_v38 = vadd.f32 %v1403_v9, %v1295_v4  ;;  %v1285_v10 = vpop.f32.mrb[6].mxu0 }
 0x26d   : > { %v1757_v56 = vpack.c.bf16 %v1454_v58, %v1452_v36  ;;  %v1296_v5 = vmul.f32 %v1851_v1, %v1285_v10  ;;  %v1287_v18 = vpop.f32.mrb[7].mxu0  ;;  %v1448_v21 = vadd.f32 %v1437_v50, %v1416_v16 }
 0x26e   : > { %v1297_v52 = vmul.f32 %v1853_v34, %v1287_v18  ;;  %v1755_v6 = vpack.c.bf16 %v1455_v63, %v1453_v62  ;;  %v1449_v12 = vadd.f32 %v1437_v50, %v1417_v38 }
 0x26f   : > { %v1418_v51 = vadd.f32 %v1407_v7, %v1296_v5  ;;  %v1456_v45 = vmax.f32 %v1448_v21, 0.0 }
 0x270   : > { %v1419_v29 = vadd.f32 %v1409_v8, %v1297_v52  ;;  %1756 = vmatprep.subr.bf16.mxu1 %v1755_v6  ;;  %v1457_v41 = vmax.f32 %v1449_v12, 0.0 }
 0x271   : > { %v1450_v3 = vadd.f32 %v1442_v2, %v1418_v51  ;;  %1758 = vmatpush1.bf16.msra.mxu1 %v1757_v56 }
 0x272   : > { %v1451_v44 = vadd.f32 %v1442_v2, %v1419_v29 }
 0x273   : > { %v1458_v20 = vmax.f32 %v1450_v3, 0.0 }
 0x274   : > { %v1459_v42 = vmax.f32 %v1451_v44, 0.0 }
 0x275   : > { %v1761_v23 = vpack.c.bf16 %v1458_v20, %v1456_v45 }
 0x276   : > { %v1759_v28 = vpack.c.bf16 %v1459_v42, %v1457_v41 }
 0x278   : > { %1760 = vmatprep.subr.bf16.mxu1 %v1759_v28 }
 0x279   : > { %1762 = vmatpush1.bf16.msra.mxu1 %v1761_v23 }
 0x27c   : > { %1727 = vmatmul.mubr.msk.f32.vlgmr.msra.gmra.mrb[8].mxu1 %vm1474_vm5, %v1460_v43 }
 0x27d   : > { %1551 = vmatprep.mubr.f32.mxu1 %v1937_v30 }
 0x280   : > { %1728 = vmatmul.mubr.msk.f32.gmra.mrb[10].mxu1 %vm1474_vm5, %v1461_v48 }
 0x34f   : > { %v1547_v49 = vpop.f32.mrb[8].mxu1 }
 0x350   : > { %v1548_v26 = vadd.f32 %v1547_v49, %v1467_v25  ;;  %v1549_v11 = vpop.f32.mrb[9].mxu1 }
 0x351   : > { %v1550_v47 = vadd.f32 %v1549_v11, %v1467_v25 }
 0x352   : > { %v1558_v60 = vmax.f32 %v1548_v26, 0.0 }
 0x353   : > { %v1559_v13 = vmax.f32 %v1550_v47, 0.0  ;;  %v1553_v9 = vpop.f32.mrb[10].mxu1 }
 0x354   : > { %1562 = vst [vmem:[%s379_s11] sm:$0xff] %v1558_v60  ;;  %v1554_v30 = vadd.f32 %v1553_v9, %v1472_v61  ;;  %v1555_v7 = vpop.f32.mrb[11].mxu1 }
 0x355   : > { %1563 = vst [vmem:[%s379_s11 + $0x8] sm:$0xff] %v1559_v13  ;;  %v1556_v8 = vadd.f32 %v1555_v7, %v1472_v61 }
 0x356   : > { %v1560_v1 = vmax.f32 %v1554_v30, 0.0 }
 0x357   : > { %v1561_v35 = vmax.f32 %v1556_v8, 0.0 }
 0x358   : > { %1564 = vst [vmem:[%s379_s11 + $0x10] sm:$0xff] %v1560_v1 }
 0x359   : > { %1565 = vst [vmem:[%s379_s11 + $0x18] sm:$0xff] %v1561_v35 }
 0x35a   : > { %1867 = shalt.err (!%p1864_p5)
}
 0x35b   : > { %s1868_s25 = scalar_lea.hbm %s2947_s21, 512  ;;  %s1872_s14 = scalar_lea.hbm %s3003_s8, 1024 }
 0x35c   : > { %p1869_p6 = scmp.ne.s32.totalorder %s2947_s21, %s1868_s25  ;;  %p1873_p10 = scmp.lt.u32.totalorder %s2947_s21, %s3003_s8 }
 0x35d   : > { %p1874_p11 = scmp.lt.u32.totalorder %s1872_s14, %s1868_s25  ;;  %p1876_p13 = scmp.lt.u32.totalorder %s1868_s25, %s2947_s21 }
 0x35e   : > { %p1870_p7 = pnand %p1869_p6, %p2026_p4 }
 0x35f   : > { %p1875_p12 = por %p1874_p11, %p1873_p10 }
 0x360   : > { %p1871_p9 = pneg %p1870_p7 }
 0x361   : > { %p1877_p0 = por %p1876_p13, %p1875_p12 }
 0x363   : > { %p1878_p1 = pnand %p1877_p0, %p1871_p9 }
 0x365   : > { %1881 = shalt.err (!%p1878_p1)
}
 0x366   : > { %s1939_s22 = smov 256   ;;  %s1940_s30 = smov 16  }
 0x367   : > { %1763 = dma.vmem_to_hbm [thread:$0]  (%p2026_p4), %s2942_s12, 512, %s2947_s21, %s2949_s19, %s1939_s22, %s1939_s22, %s1940_s30  }
 0x368 PF: > { %p1769_p2 = scmp.ge.s32.totalorder %s1932_s10, 2  ;;  %s1597_s23 = sand.u32 1, %s1912_s27  }
 0x369   : > { %s1598_s24 = scalar_lea.sflag [#allocation3], %s1597_s23 }
 0x36a   : > { %p1766_p3 = pnand %p1769_p2, %p2033_p8 }
 0x36c   : > { %1907 = dma.done.wait (!%p1766_p3), %s1598_s24, 512  }
 0x36d   : > { %1909 = vsyncadd (!%p1766_p3), %s1598_s24, 4294966784  ;;  %s21_s10 = sadd.s32 1, %s1932_s10   ;;  %s3006_s27 = smov %s1916_s28 }
 0x36e   : > { %p18_p5 = scmp.ge.s32.totalorder %s21_s10, 4   ;;  %s3007_s28 = smov %s1920_s29 }
 0x36f   : > { %s3008_s29 = smov %s2039_s18  ;;  %s3009_s30 = smov %s1928_s9 }
 0x370   : > { %s3010_s9 = smov %s3012_s13  ;;  %20 = sbr.rel (!%p18_p5) target bundleno = 4 (0x4), region = 96 }
 0x377   :  { %1603 = vsyncpa [#allocation3], 1 }
 0x378   :  { %1605 = vsyncpa [#allocation3 + $0x1], 1 }

</bundles_post_ra>
